<compile_context>
chip_gen: v6e
topology: v6e:2x2x1
jax: 0.10.0
libtpu: 0.0.40
codegen_flags: <defaults>
</compile_context>

<pallas_src>
import numpy as np
import jax
import jax.numpy as jnp
from jax.experimental import pallas as pl
from jax.experimental.pallas import tpu as pltpu


def _round_up(x, m):
    return ((x + m - 1) // m) * m


def pack_params(params, cin, cout, k):
    """Repack conv params once per model (hoisted out of the per-call wrapper)."""
    w1, b1, w2, b2, wu, bu = params          # w1/w2: (k,k,Cin,Cout) HWIO, wu: (Cin,Cout)
    G = 8
    cin_p, cout_p = _round_up(cin, G), _round_up(cout, G)
    f32, bf16 = jnp.float32, jnp.bfloat16
    # per-tap weight matrices (k*k, Cout_p, Cin_p) as bf16 MXU operands
    w1_t = jnp.transpose(w1.astype(f32), (0, 1, 3, 2)).reshape(k * k, cout, cin)
    w1_t = jnp.pad(w1_t, ((0, 0), (0, cout_p - cout), (0, cin_p - cin))).astype(bf16)
    w2_t = jnp.transpose(w2.astype(f32), (0, 1, 3, 2)).reshape(k * k, cout, cout)
    w2_t = jnp.pad(w2_t, ((0, 0), (0, cout_p - cout), (0, cout_p - cout))).astype(bf16)
    w_res = jnp.pad(wu.astype(f32).T, ((0, cout_p - cout), (0, cin_p - cin))).astype(bf16)
    b1_p = jnp.pad(b1.astype(f32), (0, cout_p - cout)).reshape(cout_p, 1)
    b2_p = jnp.pad(b2.astype(f32), (0, cout_p - cout)).reshape(cout_p, 1)
    br_p = jnp.pad(bu.astype(f32), (0, cout_p - cout)).reshape(cout_p, 1)
    return (w1_t, b1_p, w_res, br_p, w2_t, b2_p)


def resnet_block_pallas(x_nchw, packed, cout, k):
    """ResNetBlock forward. NCHW in, NCHW out (matches the PyTorch module)."""
    w1_t, b1_p, w_res, br_p, w2_t, b2_p = packed
    N, Cin, H, W = x_nchw.shape
    p = (k - 1) // 2
    Hp, Wp = H + 2 * p, W + 2 * p
    S = Hp * Wp                        # flattened zero-padded spatial grid (lane axis)
    m0 = p * Wp + p                    # max |flattened tap offset|
    S2 = S + 2 * m0                    # conv1 output window length
    E = 2 * p + 1                      # extra pad rows so both slab margins >= 2*m0
    L = E * Wp                         # left margin (in lanes) of the flattened slab
    S3 = (Hp + 2 * E) * Wp             # flattened slab length
    base = L - m0

    G = 8
    Cin_p = _round_up(Cin, G)
    Cout_p = _round_up(cout, G)
    f32, bf16 = jnp.float32, jnp.bfloat16
    HW = H * W

    # flattened tap offsets, tap index t = kh*k + kw
    offs = [dh * Wp + dw for dh in range(-p, p + 1) for dw in range(-p, p + 1)]

    # --- single fused pad on the activation (only wrapper op touching it), cast to bf16 ---
    xp = jnp.pad(x_nchw.astype(bf16),
                 ((0, 0), (0, Cin_p - Cin), (p + E, p + E), (p, p)))
    xp = xp.reshape(N, Cin_p, S3)                      # minor-dim merge: free

    # --- interior mask as a trace-time numpy constant (no in-kernel iota / compares) ---
    u = np.arange(S2)
    g = u - m0
    row, col = g // Wp, g % Wp
    interior = ((g >= 0) & (g < S) & (row >= p) & (row < p + H) &
                (col >= p) & (col < p + W))
    mask = jnp.asarray(interior.astype(np.float32).reshape(1, S2))

    def kernel(x_ref, mask_ref, w1_ref, b1_ref, wres_ref, bres_ref,
               w2_ref, b2_ref, out_ref):
        xs = x_ref[0]                                  # (Cin_p, S3) bf16
        msk = mask_ref[...]                            # (1, S2) f32

        # conv1 via shift-and-accumulate (no im2col scratch / vst round-trip).
        acc1 = None
        for t, off in enumerate(offs):
            prod = jnp.dot(w1_ref[t], xs[:, base + off: base + off + S2],
                           preferred_element_type=f32)
            acc1 = prod if acc1 is None else acc1 + prod
        # masked ReLU: mask is the SAME-zero-padding for conv2 and kills garbage halo cols.
        h1 = (msk * jnp.maximum(acc1 + b1_ref[...], 0.0)).astype(bf16)   # (Cout_p, S2)

        # 1x1 residual projection on the same slab (exact: halo columns are zero).
        res = jnp.dot(wres_ref[...], xs[:, L: L + S],
                      preferred_element_type=f32) + bres_ref[...]         # (Cout_p, S)

        # conv2 via shift-and-accumulate.
        acc2 = None
        for t, off in enumerate(offs):
            prod = jnp.dot(w2_ref[t], h1[:, m0 + off: m0 + off + S],
                           preferred_element_type=f32)
            acc2 = prod if acc2 is None else acc2 + prod
        out = jnp.maximum(acc2 + b2_ref[...] + res, 0.0)                  # (Cout_p, S)

        # store only the HxW interior -> kernel emits cropped, flattened NCHW directly.
        for h in range(H):
            src = out[:cout, (p + h) * Wp + p: (p + h) * Wp + p + W]
            out_ref[0, :, h * W:(h + 1) * W] = src.astype(out_ref.dtype)

    out_flat = pl.pallas_call(
        kernel,
        out_shape=jax.ShapeDtypeStruct((N, cout, HW), f32),
        grid_spec=pltpu.PrefetchScalarGridSpec(
            num_scalar_prefetch=0,
            grid=(N,),
            in_specs=[
                pl.BlockSpec((1, Cin_p, S3), lambda b: (b, 0, 0)),
                pl.BlockSpec((1, S2), lambda b: (0, 0)),
                pl.BlockSpec((k * k, Cout_p, Cin_p), lambda b: (0, 0, 0)),
                pl.BlockSpec((Cout_p, 1), lambda b: (0, 0)),
                pl.BlockSpec((Cout_p, Cin_p), lambda b: (0, 0)),
                pl.BlockSpec((Cout_p, 1), lambda b: (0, 0)),
                pl.BlockSpec((k * k, Cout_p, Cout_p), lambda b: (0, 0, 0)),
                pl.BlockSpec((Cout_p, 1), lambda b: (0, 0)),
            ],
            out_specs=pl.BlockSpec((1, cout, HW), lambda b: (b, 0, 0)),
        ),
        compiler_params=pltpu.CompilerParams(
            dimension_semantics=("parallel",),
            vmem_limit_bytes=32 * 1024 * 1024),
    )(xp, mask, w1_t, b1_p, w_res, br_p, w2_t, b2_p)

    return out_flat.reshape(N, cout, H, W)             # minor-dim split: free, no copy


def init_params(key, cin, cout, k):
    """Deterministic synthetic params, shapes matching nn.Conv2d (stored as HWIO)."""
    keys = jax.random.split(key, 6)
    s1 = 1.0 / jnp.sqrt(cin * k * k)
    w1 = jax.random.uniform(keys[0], (k, k, cin, cout), jnp.float32, -s1, s1)
    b1 = jax.random.uniform(keys[1], (cout,), jnp.float32, -s1, s1)
    s2 = 1.0 / jnp.sqrt(cout * k * k)
    w2 = jax.random.uniform(keys[2], (k, k, cout, cout), jnp.float32, -s2, s2)
    b2 = jax.random.uniform(keys[3], (cout,), jnp.float32, -s2, s2)
    if cin != cout:
        su = 1.0 / jnp.sqrt(cin)
        wu = jax.random.uniform(keys[4], (cin, cout), jnp.float32, -su, su)
        bu = jax.random.uniform(keys[5], (cout,), jnp.float32, -su, su)
    else:
        # upsample == None in the PyTorch module -> identity 1x1 conv is exact.
        wu = jnp.eye(cin, dtype=jnp.float32)
        bu = jnp.zeros((cout,), jnp.float32)
    return w1, b1, w2, b2, wu, bu


def resnet_block_ref(x_nchw, params):
    """Pure-JAX reference (lax conv, f32) for correctness check."""
    w1, b1, w2, b2, wu, bu = params
    x = jnp.transpose(x_nchw, (0, 2, 3, 1)).astype(jnp.float32)
    dn = ('NHWC', 'HWIO', 'NHWC')
    h = jax.lax.conv_general_dilated(x, w1, (1, 1), 'SAME', dimension_numbers=dn) + b1
    h = jnp.maximum(h, 0.0)
    h = jax.lax.conv_general_dilated(h, w2, (1, 1), 'SAME', dimension_numbers=dn) + b2
    res = jnp.einsum('nhwc,cd->nhwd', x, wu) + bu
    out = jnp.maximum(h + res, 0.0)
    return jnp.transpose(out, (0, 3, 1, 2))


if __name__ == "__main__":
    key = jax.random.PRNGKey(0)
    kx, kp = jax.random.split(key)

    # ResNetBlock(input_channels=4, output_channels=8, filter_size=3)
    N, Cin, H, W = 2, 4, 16, 16
    Cout, ksize = 8, 3

    x = jax.random.normal(kx, (N, Cin, H, W), jnp.float32)
    params = init_params(kp, Cin, Cout, ksize)

    # weight repacking happens ONCE per model, not per forward call.
    packed = pack_params(params, Cin, Cout, ksize)

    fwd = jax.jit(resnet_block_pallas, static_argnums=(2, 3))
    out = jax.block_until_ready(fwd(x, packed, Cout, ksize))

    ref = resnet_block_ref(x, params)
    assert out.shape == (N, Cout, H, W), out.shape
    err = float(jnp.max(jnp.abs(out - ref)))
    # bf16 MXU operands with f32 accumulation -> looser tolerance than pure f32.
    assert err < 3e-2, err

    print("KERNEL_OK")
</pallas_src>

<mosaic_0001>
module attributes {stable_mosaic.version = 11 : i64} {
  func.func @kernel(%arg0: i32, %arg1: memref<1x8x432xbf16, #tpu.memory_space<vmem>>, %arg2: memref<1x362xf32, #tpu.memory_space<vmem>>, %arg3: memref<9x8x8xbf16, #tpu.memory_space<vmem>>, %arg4: memref<8x1xf32, #tpu.memory_space<vmem>>, %arg5: memref<8x8xbf16, #tpu.memory_space<vmem>>, %arg6: memref<8x1xf32, #tpu.memory_space<vmem>>, %arg7: memref<9x8x8xbf16, #tpu.memory_space<vmem>>, %arg8: memref<8x1xf32, #tpu.memory_space<vmem>>, %arg9: memref<1x8x256xf32, #tpu.memory_space<vmem>>) attributes {dimension_semantics = [#tpu.dimension_semantics<parallel>], iteration_bounds = array<i64: 2>, scalar_prefetch = 0 : i64, scratch_operands = 0 : i64, tpu.core_type = #tpu.core_type<tc>, window_params = [{transform_indices = @transform_0, window_bounds = array<i64: 1, 8, 432>}, {pipeline_mode = #tpu.pipeline_mode<synchronous>, transform_indices = @transform_1, window_bounds = array<i64: 1, 362>}, {pipeline_mode = #tpu.pipeline_mode<synchronous>, transform_indices = @transform_2, window_bounds = array<i64: 9, 8, 8>}, {pipeline_mode = #tpu.pipeline_mode<synchronous>, transform_indices = @transform_3, window_bounds = array<i64: 8, 1>}, {pipeline_mode = #tpu.pipeline_mode<synchronous>, transform_indices = @transform_4, window_bounds = array<i64: 8, 8>}, {pipeline_mode = #tpu.pipeline_mode<synchronous>, transform_indices = @transform_5, window_bounds = array<i64: 8, 1>}, {pipeline_mode = #tpu.pipeline_mode<synchronous>, transform_indices = @transform_6, window_bounds = array<i64: 9, 8, 8>}, {pipeline_mode = #tpu.pipeline_mode<synchronous>, transform_indices = @transform_7, window_bounds = array<i64: 8, 1>}, {transform_indices = @transform_8, window_bounds = array<i64: 1, 8, 256>}]} {
    %c0 = arith.constant 0 : index
    %c0_0 = arith.constant 0 : index
    %c0_1 = arith.constant 0 : index
    %0 = vector.load %arg1[%c0, %c0_0, %c0_1] : memref<1x8x432xbf16, #tpu.memory_space<vmem>>, vector<1x8x432xbf16>
    %1 = vector.shape_cast %0 : vector<1x8x432xbf16> to vector<8x432xbf16>
    %c0_2 = arith.constant 0 : index
    %c0_3 = arith.constant 0 : index
    %2 = vector.load %arg2[%c0_2, %c0_3] : memref<1x362xf32, #tpu.memory_space<vmem>>, vector<1x362xf32>
    %c0_4 = arith.constant 0 : index
    %c0_5 = arith.constant 0 : index
    %c0_6 = arith.constant 0 : index
    %3 = vector.load %arg3[%c0_4, %c0_5, %c0_6] : memref<9x8x8xbf16, #tpu.memory_space<vmem>>, vector<1x8x8xbf16>
    %4 = vector.shape_cast %3 : vector<1x8x8xbf16> to vector<8x8xbf16>
    %5 = vector.extract_strided_slice %1 {offsets = [0, 16], sizes = [8, 362], strides = [1, 1]} : vector<8x432xbf16> to vector<8x362xbf16>
    %cst = arith.constant dense<0.000000e+00> : vector<8x362xf32>
    %6 = tpu.matmul %4, %5, %cst {dimension_numbers = #tpu.dot_dimension_numbers<[1], [0], [0], [1], [0, 0, 1, 1], [], []>} : vector<8x8xbf16>, vector<8x362xbf16>, vector<8x362xf32> -> vector<8x362xf32>
    %c1 = arith.constant 1 : index
    %c0_7 = arith.constant 0 : index
    %c0_8 = arith.constant 0 : index
    %7 = vector.load %arg3[%c1, %c0_7, %c0_8] : memref<9x8x8xbf16, #tpu.memory_space<vmem>>, vector<1x8x8xbf16>
    %8 = vector.shape_cast %7 : vector<1x8x8xbf16> to vector<8x8xbf16>
    %9 = vector.extract_strided_slice %1 {offsets = [0, 17], sizes = [8, 362], strides = [1, 1]} : vector<8x432xbf16> to vector<8x362xbf16>
    %cst_9 = arith.constant dense<0.000000e+00> : vector<8x362xf32>
    %10 = tpu.matmul %8, %9, %cst_9 {dimension_numbers = #tpu.dot_dimension_numbers<[1], [0], [0], [1], [0, 0, 1, 1], [], []>} : vector<8x8xbf16>, vector<8x362xbf16>, vector<8x362xf32> -> vector<8x362xf32>
    %11 = arith.addf %6, %10 : vector<8x362xf32>
    %c2 = arith.constant 2 : index
    %c0_10 = arith.constant 0 : index
    %c0_11 = arith.constant 0 : index
    %12 = vector.load %arg3[%c2, %c0_10, %c0_11] : memref<9x8x8xbf16, #tpu.memory_space<vmem>>, vector<1x8x8xbf16>
    %13 = vector.shape_cast %12 : vector<1x8x8xbf16> to vector<8x8xbf16>
    %14 = vector.extract_strided_slice %1 {offsets = [0, 18], sizes = [8, 362], strides = [1, 1]} : vector<8x432xbf16> to vector<8x362xbf16>
    %cst_12 = arith.constant dense<0.000000e+00> : vector<8x362xf32>
    %15 = tpu.matmul %13, %14, %cst_12 {dimension_numbers = #tpu.dot_dimension_numbers<[1], [0], [0], [1], [0, 0, 1, 1], [], []>} : vector<8x8xbf16>, vector<8x362xbf16>, vector<8x362xf32> -> vector<8x362xf32>
    %16 = arith.addf %11, %15 : vector<8x362xf32>
    %c3 = arith.constant 3 : index
    %c0_13 = arith.constant 0 : index
    %c0_14 = arith.constant 0 : index
    %17 = vector.load %arg3[%c3, %c0_13, %c0_14] : memref<9x8x8xbf16, #tpu.memory_space<vmem>>, vector<1x8x8xbf16>
    %18 = vector.shape_cast %17 : vector<1x8x8xbf16> to vector<8x8xbf16>
    %19 = vector.extract_strided_slice %1 {offsets = [0, 34], sizes = [8, 362], strides = [1, 1]} : vector<8x432xbf16> to vector<8x362xbf16>
    %cst_15 = arith.constant dense<0.000000e+00> : vector<8x362xf32>
    %20 = tpu.matmul %18, %19, %cst_15 {dimension_numbers = #tpu.dot_dimension_numbers<[1], [0], [0], [1], [0, 0, 1, 1], [], []>} : vector<8x8xbf16>, vector<8x362xbf16>, vector<8x362xf32> -> vector<8x362xf32>
    %21 = arith.addf %16, %20 : vector<8x362xf32>
    %c4 = arith.constant 4 : index
    %c0_16 = arith.constant 0 : index
    %c0_17 = arith.constant 0 : index
    %22 = vector.load %arg3[%c4, %c0_16, %c0_17] : memref<9x8x8xbf16, #tpu.memory_space<vmem>>, vector<1x8x8xbf16>
    %23 = vector.shape_cast %22 : vector<1x8x8xbf16> to vector<8x8xbf16>
    %24 = vector.extract_strided_slice %1 {offsets = [0, 35], sizes = [8, 362], strides = [1, 1]} : vector<8x432xbf16> to vector<8x362xbf16>
    %cst_18 = arith.constant dense<0.000000e+00> : vector<8x362xf32>
    %25 = tpu.matmul %23, %24, %cst_18 {dimension_numbers = #tpu.dot_dimension_numbers<[1], [0], [0], [1], [0, 0, 1, 1], [], []>} : vector<8x8xbf16>, vector<8x362xbf16>, vector<8x362xf32> -> vector<8x362xf32>
    %26 = arith.addf %21, %25 : vector<8x362xf32>
    %c5 = arith.constant 5 : index
    %c0_19 = arith.constant 0 : index
    %c0_20 = arith.constant 0 : index
    %27 = vector.load %arg3[%c5, %c0_19, %c0_20] : memref<9x8x8xbf16, #tpu.memory_space<vmem>>, vector<1x8x8xbf16>
    %28 = vector.shape_cast %27 : vector<1x8x8xbf16> to vector<8x8xbf16>
    %29 = vector.extract_strided_slice %1 {offsets = [0, 36], sizes = [8, 362], strides = [1, 1]} : vector<8x432xbf16> to vector<8x362xbf16>
    %cst_21 = arith.constant dense<0.000000e+00> : vector<8x362xf32>
    %30 = tpu.matmul %28, %29, %cst_21 {dimension_numbers = #tpu.dot_dimension_numbers<[1], [0], [0], [1], [0, 0, 1, 1], [], []>} : vector<8x8xbf16>, vector<8x362xbf16>, vector<8x362xf32> -> vector<8x362xf32>
    %31 = arith.addf %26, %30 : vector<8x362xf32>
    %c6 = arith.constant 6 : index
    %c0_22 = arith.constant 0 : index
    %c0_23 = arith.constant 0 : index
    %32 = vector.load %arg3[%c6, %c0_22, %c0_23] : memref<9x8x8xbf16, #tpu.memory_space<vmem>>, vector<1x8x8xbf16>
    %33 = vector.shape_cast %32 : vector<1x8x8xbf16> to vector<8x8xbf16>
    %34 = vector.extract_strided_slice %1 {offsets = [0, 52], sizes = [8, 362], strides = [1, 1]} : vector<8x432xbf16> to vector<8x362xbf16>
    %cst_24 = arith.constant dense<0.000000e+00> : vector<8x362xf32>
    %35 = tpu.matmul %33, %34, %cst_24 {dimension_numbers = #tpu.dot_dimension_numbers<[1], [0], [0], [1], [0, 0, 1, 1], [], []>} : vector<8x8xbf16>, vector<8x362xbf16>, vector<8x362xf32> -> vector<8x362xf32>
    %36 = arith.addf %31, %35 : vector<8x362xf32>
    %c7 = arith.constant 7 : index
    %c0_25 = arith.constant 0 : index
    %c0_26 = arith.constant 0 : index
    %37 = vector.load %arg3[%c7, %c0_25, %c0_26] : memref<9x8x8xbf16, #tpu.memory_space<vmem>>, vector<1x8x8xbf16>
    %38 = vector.shape_cast %37 : vector<1x8x8xbf16> to vector<8x8xbf16>
    %39 = vector.extract_strided_slice %1 {offsets = [0, 53], sizes = [8, 362], strides = [1, 1]} : vector<8x432xbf16> to vector<8x362xbf16>
    %cst_27 = arith.constant dense<0.000000e+00> : vector<8x362xf32>
    %40 = tpu.matmul %38, %39, %cst_27 {dimension_numbers = #tpu.dot_dimension_numbers<[1], [0], [0], [1], [0, 0, 1, 1], [], []>} : vector<8x8xbf16>, vector<8x362xbf16>, vector<8x362xf32> -> vector<8x362xf32>
    %41 = arith.addf %36, %40 : vector<8x362xf32>
    %c8 = arith.constant 8 : index
    %c0_28 = arith.constant 0 : index
    %c0_29 = arith.constant 0 : index
    %42 = vector.load %arg3[%c8, %c0_28, %c0_29] : memref<9x8x8xbf16, #tpu.memory_space<vmem>>, vector<1x8x8xbf16>
    %43 = vector.shape_cast %42 : vector<1x8x8xbf16> to vector<8x8xbf16>
    %44 = vector.extract_strided_slice %1 {offsets = [0, 54], sizes = [8, 362], strides = [1, 1]} : vector<8x432xbf16> to vector<8x362xbf16>
    %cst_30 = arith.constant dense<0.000000e+00> : vector<8x362xf32>
    %45 = tpu.matmul %43, %44, %cst_30 {dimension_numbers = #tpu.dot_dimension_numbers<[1], [0], [0], [1], [0, 0, 1, 1], [], []>} : vector<8x8xbf16>, vector<8x362xbf16>, vector<8x362xf32> -> vector<8x362xf32>
    %46 = arith.addf %41, %45 : vector<8x362xf32>
    %c0_31 = arith.constant 0 : index
    %c0_32 = arith.constant 0 : index
    %47 = vector.load %arg4[%c0_31, %c0_32] : memref<8x1xf32, #tpu.memory_space<vmem>>, vector<8x1xf32>
    %48 = vector.broadcast %47 : vector<8x1xf32> to vector<8x362xf32>
    %49 = arith.addf %46, %48 : vector<8x362xf32>
    %cst_33 = arith.constant 0.000000e+00 : f32
    %50 = vector.broadcast %cst_33 : f32 to vector<8x362xf32>
    %51 = arith.maximumf %49, %50 : vector<8x362xf32>
    %52 = vector.broadcast %2 : vector<1x362xf32> to vector<8x362xf32>
    %53 = arith.mulf %52, %51 : vector<8x362xf32>
    %54 = arith.truncf %53 : vector<8x362xf32> to vector<8x362xbf16>
    %c0_34 = arith.constant 0 : index
    %c0_35 = arith.constant 0 : index
    %55 = vector.load %arg5[%c0_34, %c0_35] : memref<8x8xbf16, #tpu.memory_space<vmem>>, vector<8x8xbf16>
    %56 = vector.extract_strided_slice %1 {offsets = [0, 54], sizes = [8, 324], strides = [1, 1]} : vector<8x432xbf16> to vector<8x324xbf16>
    %cst_36 = arith.constant dense<0.000000e+00> : vector<8x324xf32>
    %57 = tpu.matmul %55, %56, %cst_36 {dimension_numbers = #tpu.dot_dimension_numbers<[1], [0], [0], [1], [0, 0, 1, 1], [], []>} : vector<8x8xbf16>, vector<8x324xbf16>, vector<8x324xf32> -> vector<8x324xf32>
    %c0_37 = arith.constant 0 : index
    %c0_38 = arith.constant 0 : index
    %58 = vector.load %arg6[%c0_37, %c0_38] : memref<8x1xf32, #tpu.memory_space<vmem>>, vector<8x1xf32>
    %59 = vector.broadcast %58 : vector<8x1xf32> to vector<8x324xf32>
    %60 = arith.addf %57, %59 : vector<8x324xf32>
    %c0_39 = arith.constant 0 : index
    %c0_40 = arith.constant 0 : index
    %c0_41 = arith.constant 0 : index
    %61 = vector.load %arg7[%c0_39, %c0_40, %c0_41] : memref<9x8x8xbf16, #tpu.memory_space<vmem>>, vector<1x8x8xbf16>
    %62 = vector.shape_cast %61 : vector<1x8x8xbf16> to vector<8x8xbf16>
    %63 = vector.extract_strided_slice %54 {offsets = [0, 0], sizes = [8, 324], strides = [1, 1]} : vector<8x362xbf16> to vector<8x324xbf16>
    %cst_42 = arith.constant dense<0.000000e+00> : vector<8x324xf32>
    %64 = tpu.matmul %62, %63, %cst_42 {dimension_numbers = #tpu.dot_dimension_numbers<[1], [0], [0], [1], [0, 0, 1, 1], [], []>} : vector<8x8xbf16>, vector<8x324xbf16>, vector<8x324xf32> -> vector<8x324xf32>
    %c1_43 = arith.constant 1 : index
    %c0_44 = arith.constant 0 : index
    %c0_45 = arith.constant 0 : index
    %65 = vector.load %arg7[%c1_43, %c0_44, %c0_45] : memref<9x8x8xbf16, #tpu.memory_space<vmem>>, vector<1x8x8xbf16>
    %66 = vector.shape_cast %65 : vector<1x8x8xbf16> to vector<8x8xbf16>
    %67 = vector.extract_strided_slice %54 {offsets = [0, 1], sizes = [8, 324], strides = [1, 1]} : vector<8x362xbf16> to vector<8x324xbf16>
    %cst_46 = arith.constant dense<0.000000e+00> : vector<8x324xf32>
    %68 = tpu.matmul %66, %67, %cst_46 {dimension_numbers = #tpu.dot_dimension_numbers<[1], [0], [0], [1], [0, 0, 1, 1], [], []>} : vector<8x8xbf16>, vector<8x324xbf16>, vector<8x324xf32> -> vector<8x324xf32>
    %69 = arith.addf %64, %68 : vector<8x324xf32>
    %c2_47 = arith.constant 2 : index
    %c0_48 = arith.constant 0 : index
    %c0_49 = arith.constant 0 : index
    %70 = vector.load %arg7[%c2_47, %c0_48, %c0_49] : memref<9x8x8xbf16, #tpu.memory_space<vmem>>, vector<1x8x8xbf16>
    %71 = vector.shape_cast %70 : vector<1x8x8xbf16> to vector<8x8xbf16>
    %72 = vector.extract_strided_slice %54 {offsets = [0, 2], sizes = [8, 324], strides = [1, 1]} : vector<8x362xbf16> to vector<8x324xbf16>
    %cst_50 = arith.constant dense<0.000000e+00> : vector<8x324xf32>
    %73 = tpu.matmul %71, %72, %cst_50 {dimension_numbers = #tpu.dot_dimension_numbers<[1], [0], [0], [1], [0, 0, 1, 1], [], []>} : vector<8x8xbf16>, vector<8x324xbf16>, vector<8x324xf32> -> vector<8x324xf32>
    %74 = arith.addf %69, %73 : vector<8x324xf32>
    %c3_51 = arith.constant 3 : index
    %c0_52 = arith.constant 0 : index
    %c0_53 = arith.constant 0 : index
    %75 = vector.load %arg7[%c3_51, %c0_52, %c0_53] : memref<9x8x8xbf16, #tpu.memory_space<vmem>>, vector<1x8x8xbf16>
    %76 = vector.shape_cast %75 : vector<1x8x8xbf16> to vector<8x8xbf16>
    %77 = vector.extract_strided_slice %54 {offsets = [0, 18], sizes = [8, 324], strides = [1, 1]} : vector<8x362xbf16> to vector<8x324xbf16>
    %cst_54 = arith.constant dense<0.000000e+00> : vector<8x324xf32>
    %78 = tpu.matmul %76, %77, %cst_54 {dimension_numbers = #tpu.dot_dimension_numbers<[1], [0], [0], [1], [0, 0, 1, 1], [], []>} : vector<8x8xbf16>, vector<8x324xbf16>, vector<8x324xf32> -> vector<8x324xf32>
    %79 = arith.addf %74, %78 : vector<8x324xf32>
    %c4_55 = arith.constant 4 : index
    %c0_56 = arith.constant 0 : index
    %c0_57 = arith.constant 0 : index
    %80 = vector.load %arg7[%c4_55, %c0_56, %c0_57] : memref<9x8x8xbf16, #tpu.memory_space<vmem>>, vector<1x8x8xbf16>
    %81 = vector.shape_cast %80 : vector<1x8x8xbf16> to vector<8x8xbf16>
    %82 = vector.extract_strided_slice %54 {offsets = [0, 19], sizes = [8, 324], strides = [1, 1]} : vector<8x362xbf16> to vector<8x324xbf16>
    %cst_58 = arith.constant dense<0.000000e+00> : vector<8x324xf32>
    %83 = tpu.matmul %81, %82, %cst_58 {dimension_numbers = #tpu.dot_dimension_numbers<[1], [0], [0], [1], [0, 0, 1, 1], [], []>} : vector<8x8xbf16>, vector<8x324xbf16>, vector<8x324xf32> -> vector<8x324xf32>
    %84 = arith.addf %79, %83 : vector<8x324xf32>
    %c5_59 = arith.constant 5 : index
    %c0_60 = arith.constant 0 : index
    %c0_61 = arith.constant 0 : index
    %85 = vector.load %arg7[%c5_59, %c0_60, %c0_61] : memref<9x8x8xbf16, #tpu.memory_space<vmem>>, vector<1x8x8xbf16>
    %86 = vector.shape_cast %85 : vector<1x8x8xbf16> to vector<8x8xbf16>
    %87 = vector.extract_strided_slice %54 {offsets = [0, 20], sizes = [8, 324], strides = [1, 1]} : vector<8x362xbf16> to vector<8x324xbf16>
    %cst_62 = arith.constant dense<0.000000e+00> : vector<8x324xf32>
    %88 = tpu.matmul %86, %87, %cst_62 {dimension_numbers = #tpu.dot_dimension_numbers<[1], [0], [0], [1], [0, 0, 1, 1], [], []>} : vector<8x8xbf16>, vector<8x324xbf16>, vector<8x324xf32> -> vector<8x324xf32>
    %89 = arith.addf %84, %88 : vector<8x324xf32>
    %c6_63 = arith.constant 6 : index
    %c0_64 = arith.constant 0 : index
    %c0_65 = arith.constant 0 : index
    %90 = vector.load %arg7[%c6_63, %c0_64, %c0_65] : memref<9x8x8xbf16, #tpu.memory_space<vmem>>, vector<1x8x8xbf16>
    %91 = vector.shape_cast %90 : vector<1x8x8xbf16> to vector<8x8xbf16>
    %92 = vector.extract_strided_slice %54 {offsets = [0, 36], sizes = [8, 324], strides = [1, 1]} : vector<8x362xbf16> to vector<8x324xbf16>
    %cst_66 = arith.constant dense<0.000000e+00> : vector<8x324xf32>
    %93 = tpu.matmul %91, %92, %cst_66 {dimension_numbers = #tpu.dot_dimension_numbers<[1], [0], [0], [1], [0, 0, 1, 1], [], []>} : vector<8x8xbf16>, vector<8x324xbf16>, vector<8x324xf32> -> vector<8x324xf32>
    %94 = arith.addf %89, %93 : vector<8x324xf32>
    %c7_67 = arith.constant 7 : index
    %c0_68 = arith.constant 0 : index
    %c0_69 = arith.constant 0 : index
    %95 = vector.load %arg7[%c7_67, %c0_68, %c0_69] : memref<9x8x8xbf16, #tpu.memory_space<vmem>>, vector<1x8x8xbf16>
    %96 = vector.shape_cast %95 : vector<1x8x8xbf16> to vector<8x8xbf16>
    %97 = vector.extract_strided_slice %54 {offsets = [0, 37], sizes = [8, 324], strides = [1, 1]} : vector<8x362xbf16> to vector<8x324xbf16>
    %cst_70 = arith.constant dense<0.000000e+00> : vector<8x324xf32>
    %98 = tpu.matmul %96, %97, %cst_70 {dimension_numbers = #tpu.dot_dimension_numbers<[1], [0], [0], [1], [0, 0, 1, 1], [], []>} : vector<8x8xbf16>, vector<8x324xbf16>, vector<8x324xf32> -> vector<8x324xf32>
    %99 = arith.addf %94, %98 : vector<8x324xf32>
    %c8_71 = arith.constant 8 : index
    %c0_72 = arith.constant 0 : index
    %c0_73 = arith.constant 0 : index
    %100 = vector.load %arg7[%c8_71, %c0_72, %c0_73] : memref<9x8x8xbf16, #tpu.memory_space<vmem>>, vector<1x8x8xbf16>
    %101 = vector.shape_cast %100 : vector<1x8x8xbf16> to vector<8x8xbf16>
    %102 = vector.extract_strided_slice %54 {offsets = [0, 38], sizes = [8, 324], strides = [1, 1]} : vector<8x362xbf16> to vector<8x324xbf16>
    %cst_74 = arith.constant dense<0.000000e+00> : vector<8x324xf32>
    %103 = tpu.matmul %101, %102, %cst_74 {dimension_numbers = #tpu.dot_dimension_numbers<[1], [0], [0], [1], [0, 0, 1, 1], [], []>} : vector<8x8xbf16>, vector<8x324xbf16>, vector<8x324xf32> -> vector<8x324xf32>
    %104 = arith.addf %99, %103 : vector<8x324xf32>
    %c0_75 = arith.constant 0 : index
    %c0_76 = arith.constant 0 : index
    %105 = vector.load %arg8[%c0_75, %c0_76] : memref<8x1xf32, #tpu.memory_space<vmem>>, vector<8x1xf32>
    %106 = vector.broadcast %105 : vector<8x1xf32> to vector<8x324xf32>
    %107 = arith.addf %104, %106 : vector<8x324xf32>
    %108 = arith.addf %107, %60 : vector<8x324xf32>
    %cst_77 = arith.constant 0.000000e+00 : f32
    %109 = vector.broadcast %cst_77 : f32 to vector<8x324xf32>
    %110 = arith.maximumf %108, %109 : vector<8x324xf32>
    %111 = vector.extract_strided_slice %110 {offsets = [0, 19], sizes = [8, 16], strides = [1, 1]} : vector<8x324xf32> to vector<8x16xf32>
    %c0_78 = arith.constant 0 : index
    %c0_79 = arith.constant 0 : index
    %c0_80 = arith.constant 0 : index
    %112 = vector.load %arg9[%c0_78, %c0_79, %c0_80] : memref<1x8x256xf32, #tpu.memory_space<vmem>>, vector<1x8x16xf32>
    %113 = vector.shape_cast %112 : vector<1x8x16xf32> to vector<8x16xf32>
    %114 = vector.shape_cast %111 : vector<8x16xf32> to vector<1x8x16xf32>
    tpu.vector_store %arg9[%c0_78, %c0_79, %c0_80], %114 {strides = array<i32>} : memref<1x8x256xf32, #tpu.memory_space<vmem>>, vector<1x8x16xf32>,
    %115 = vector.extract_strided_slice %110 {offsets = [0, 37], sizes = [8, 16], strides = [1, 1]} : vector<8x324xf32> to vector<8x16xf32>
    %c0_81 = arith.constant 0 : index
    %c0_82 = arith.constant 0 : index
    %c16 = arith.constant 16 : index
    %116 = vector.load %arg9[%c0_81, %c0_82, %c16] : memref<1x8x256xf32, #tpu.memory_space<vmem>>, vector<1x8x16xf32>
    %117 = vector.shape_cast %116 : vector<1x8x16xf32> to vector<8x16xf32>
    %118 = vector.shape_cast %115 : vector<8x16xf32> to vector<1x8x16xf32>
    tpu.vector_store %arg9[%c0_81, %c0_82, %c16], %118 {strides = array<i32>} : memref<1x8x256xf32, #tpu.memory_space<vmem>>, vector<1x8x16xf32>,
    %119 = vector.extract_strided_slice %110 {offsets = [0, 55], sizes = [8, 16], strides = [1, 1]} : vector<8x324xf32> to vector<8x16xf32>
    %c0_83 = arith.constant 0 : index
    %c0_84 = arith.constant 0 : index
    %c32 = arith.constant 32 : index
    %120 = vector.load %arg9[%c0_83, %c0_84, %c32] : memref<1x8x256xf32, #tpu.memory_space<vmem>>, vector<1x8x16xf32>
    %121 = vector.shape_cast %120 : vector<1x8x16xf32> to vector<8x16xf32>
    %122 = vector.shape_cast %119 : vector<8x16xf32> to vector<1x8x16xf32>
    tpu.vector_store %arg9[%c0_83, %c0_84, %c32], %122 {strides = array<i32>} : memref<1x8x256xf32, #tpu.memory_space<vmem>>, vector<1x8x16xf32>,
    %123 = vector.extract_strided_slice %110 {offsets = [0, 73], sizes = [8, 16], strides = [1, 1]} : vector<8x324xf32> to vector<8x16xf32>
    %c0_85 = arith.constant 0 : index
    %c0_86 = arith.constant 0 : index
    %c48 = arith.constant 48 : index
    %124 = vector.load %arg9[%c0_85, %c0_86, %c48] : memref<1x8x256xf32, #tpu.memory_space<vmem>>, vector<1x8x16xf32>
    %125 = vector.shape_cast %124 : vector<1x8x16xf32> to vector<8x16xf32>
    %126 = vector.shape_cast %123 : vector<8x16xf32> to vector<1x8x16xf32>
    tpu.vector_store %arg9[%c0_85, %c0_86, %c48], %126 {strides = array<i32>} : memref<1x8x256xf32, #tpu.memory_space<vmem>>, vector<1x8x16xf32>,
    %127 = vector.extract_strided_slice %110 {offsets = [0, 91], sizes = [8, 16], strides = [1, 1]} : vector<8x324xf32> to vector<8x16xf32>
    %c0_87 = arith.constant 0 : index
    %c0_88 = arith.constant 0 : index
    %c64 = arith.constant 64 : index
    %128 = vector.load %arg9[%c0_87, %c0_88, %c64] : memref<1x8x256xf32, #tpu.memory_space<vmem>>, vector<1x8x16xf32>
    %129 = vector.shape_cast %128 : vector<1x8x16xf32> to vector<8x16xf32>
    %130 = vector.shape_cast %127 : vector<8x16xf32> to vector<1x8x16xf32>
    tpu.vector_store %arg9[%c0_87, %c0_88, %c64], %130 {strides = array<i32>} : memref<1x8x256xf32, #tpu.memory_space<vmem>>, vector<1x8x16xf32>,
    %131 = vector.extract_strided_slice %110 {offsets = [0, 109], sizes = [8, 16], strides = [1, 1]} : vector<8x324xf32> to vector<8x16xf32>
    %c0_89 = arith.constant 0 : index
    %c0_90 = arith.constant 0 : index
    %c80 = arith.constant 80 : index
    %132 = vector.load %arg9[%c0_89, %c0_90, %c80] : memref<1x8x256xf32, #tpu.memory_space<vmem>>, vector<1x8x16xf32>
    %133 = vector.shape_cast %132 : vector<1x8x16xf32> to vector<8x16xf32>
    %134 = vector.shape_cast %131 : vector<8x16xf32> to vector<1x8x16xf32>
    tpu.vector_store %arg9[%c0_89, %c0_90, %c80], %134 {strides = array<i32>} : memref<1x8x256xf32, #tpu.memory_space<vmem>>, vector<1x8x16xf32>,
    %135 = vector.extract_strided_slice %110 {offsets = [0, 127], sizes = [8, 16], strides = [1, 1]} : vector<8x324xf32> to vector<8x16xf32>
    %c0_91 = arith.constant 0 : index
    %c0_92 = arith.constant 0 : index
    %c96 = arith.constant 96 : index
    %136 = vector.load %arg9[%c0_91, %c0_92, %c96] : memref<1x8x256xf32, #tpu.memory_space<vmem>>, vector<1x8x16xf32>
    %137 = vector.shape_cast %136 : vector<1x8x16xf32> to vector<8x16xf32>
    %138 = vector.shape_cast %135 : vector<8x16xf32> to vector<1x8x16xf32>
    tpu.vector_store %arg9[%c0_91, %c0_92, %c96], %138 {strides = array<i32>} : memref<1x8x256xf32, #tpu.memory_space<vmem>>, vector<1x8x16xf32>,
    %139 = vector.extract_strided_slice %110 {offsets = [0, 145], sizes = [8, 16], strides = [1, 1]} : vector<8x324xf32> to vector<8x16xf32>
    %c0_93 = arith.constant 0 : index
    %c0_94 = arith.constant 0 : index
    %c112 = arith.constant 112 : index
    %140 = vector.load %arg9[%c0_93, %c0_94, %c112] : memref<1x8x256xf32, #tpu.memory_space<vmem>>, vector<1x8x16xf32>
    %141 = vector.shape_cast %140 : vector<1x8x16xf32> to vector<8x16xf32>
    %142 = vector.shape_cast %139 : vector<8x16xf32> to vector<1x8x16xf32>
    tpu.vector_store %arg9[%c0_93, %c0_94, %c112], %142 {strides = array<i32>} : memref<1x8x256xf32, #tpu.memory_space<vmem>>, vector<1x8x16xf32>,
    %143 = vector.extract_strided_slice %110 {offsets = [0, 163], sizes = [8, 16], strides = [1, 1]} : vector<8x324xf32> to vector<8x16xf32>
    %c0_95 = arith.constant 0 : index
    %c0_96 = arith.constant 0 : index
    %c128 = arith.constant 128 : index
    %144 = vector.load %arg9[%c0_95, %c0_96, %c128] : memref<1x8x256xf32, #tpu.memory_space<vmem>>, vector<1x8x16xf32>
    %145 = vector.shape_cast %144 : vector<1x8x16xf32> to vector<8x16xf32>
    %146 = vector.shape_cast %143 : vector<8x16xf32> to vector<1x8x16xf32>
    tpu.vector_store %arg9[%c0_95, %c0_96, %c128], %146 {strides = array<i32>} : memref<1x8x256xf32, #tpu.memory_space<vmem>>, vector<1x8x16xf32>,
    %147 = vector.extract_strided_slice %110 {offsets = [0, 181], sizes = [8, 16], strides = [1, 1]} : vector<8x324xf32> to vector<8x16xf32>
    %c0_97 = arith.constant 0 : index
    %c0_98 = arith.constant 0 : index
    %c144 = arith.constant 144 : index
    %148 = vector.load %arg9[%c0_97, %c0_98, %c144] : memref<1x8x256xf32, #tpu.memory_space<vmem>>, vector<1x8x16xf32>
    %149 = vector.shape_cast %148 : vector<1x8x16xf32> to vector<8x16xf32>
    %150 = vector.shape_cast %147 : vector<8x16xf32> to vector<1x8x16xf32>
    tpu.vector_store %arg9[%c0_97, %c0_98, %c144], %150 {strides = array<i32>} : memref<1x8x256xf32, #tpu.memory_space<vmem>>, vector<1x8x16xf32>,
    %151 = vector.extract_strided_slice %110 {offsets = [0, 199], sizes = [8, 16], strides = [1, 1]} : vector<8x324xf32> to vector<8x16xf32>
    %c0_99 = arith.constant 0 : index
    %c0_100 = arith.constant 0 : index
    %c160 = arith.constant 160 : index
    %152 = vector.load %arg9[%c0_99, %c0_100, %c160] : memref<1x8x256xf32, #tpu.memory_space<vmem>>, vector<1x8x16xf32>
    %153 = vector.shape_cast %152 : vector<1x8x16xf32> to vector<8x16xf32>
    %154 = vector.shape_cast %151 : vector<8x16xf32> to vector<1x8x16xf32>
    tpu.vector_store %arg9[%c0_99, %c0_100, %c160], %154 {strides = array<i32>} : memref<1x8x256xf32, #tpu.memory_space<vmem>>, vector<1x8x16xf32>,
    %155 = vector.extract_strided_slice %110 {offsets = [0, 217], sizes = [8, 16], strides = [1, 1]} : vector<8x324xf32> to vector<8x16xf32>
    %c0_101 = arith.constant 0 : index
    %c0_102 = arith.constant 0 : index
    %c176 = arith.constant 176 : index
    %156 = vector.load %arg9[%c0_101, %c0_102, %c176] : memref<1x8x256xf32, #tpu.memory_space<vmem>>, vector<1x8x16xf32>
    %157 = vector.shape_cast %156 : vector<1x8x16xf32> to vector<8x16xf32>
    %158 = vector.shape_cast %155 : vector<8x16xf32> to vector<1x8x16xf32>
    tpu.vector_store %arg9[%c0_101, %c0_102, %c176], %158 {strides = array<i32>} : memref<1x8x256xf32, #tpu.memory_space<vmem>>, vector<1x8x16xf32>,
    %159 = vector.extract_strided_slice %110 {offsets = [0, 235], sizes = [8, 16], strides = [1, 1]} : vector<8x324xf32> to vector<8x16xf32>
    %c0_103 = arith.constant 0 : index
    %c0_104 = arith.constant 0 : index
    %c192 = arith.constant 192 : index
    %160 = vector.load %arg9[%c0_103, %c0_104, %c192] : memref<1x8x256xf32, #tpu.memory_space<vmem>>, vector<1x8x16xf32>
    %161 = vector.shape_cast %160 : vector<1x8x16xf32> to vector<8x16xf32>
    %162 = vector.shape_cast %159 : vector<8x16xf32> to vector<1x8x16xf32>
    tpu.vector_store %arg9[%c0_103, %c0_104, %c192], %162 {strides = array<i32>} : memref<1x8x256xf32, #tpu.memory_space<vmem>>, vector<1x8x16xf32>,
    %163 = vector.extract_strided_slice %110 {offsets = [0, 253], sizes = [8, 16], strides = [1, 1]} : vector<8x324xf32> to vector<8x16xf32>
    %c0_105 = arith.constant 0 : index
    %c0_106 = arith.constant 0 : index
    %c208 = arith.constant 208 : index
    %164 = vector.load %arg9[%c0_105, %c0_106, %c208] : memref<1x8x256xf32, #tpu.memory_space<vmem>>, vector<1x8x16xf32>
    %165 = vector.shape_cast %164 : vector<1x8x16xf32> to vector<8x16xf32>
    %166 = vector.shape_cast %163 : vector<8x16xf32> to vector<1x8x16xf32>
    tpu.vector_store %arg9[%c0_105, %c0_106, %c208], %166 {strides = array<i32>} : memref<1x8x256xf32, #tpu.memory_space<vmem>>, vector<1x8x16xf32>,
    %167 = vector.extract_strided_slice %110 {offsets = [0, 271], sizes = [8, 16], strides = [1, 1]} : vector<8x324xf32> to vector<8x16xf32>
    %c0_107 = arith.constant 0 : index
    %c0_108 = arith.constant 0 : index
    %c224 = arith.constant 224 : index
    %168 = vector.load %arg9[%c0_107, %c0_108, %c224] : memref<1x8x256xf32, #tpu.memory_space<vmem>>, vector<1x8x16xf32>
    %169 = vector.shape_cast %168 : vector<1x8x16xf32> to vector<8x16xf32>
    %170 = vector.shape_cast %167 : vector<8x16xf32> to vector<1x8x16xf32>
    tpu.vector_store %arg9[%c0_107, %c0_108, %c224], %170 {strides = array<i32>} : memref<1x8x256xf32, #tpu.memory_space<vmem>>, vector<1x8x16xf32>,
    %171 = vector.extract_strided_slice %110 {offsets = [0, 289], sizes = [8, 16], strides = [1, 1]} : vector<8x324xf32> to vector<8x16xf32>
    %c0_109 = arith.constant 0 : index
    %c0_110 = arith.constant 0 : index
    %c240 = arith.constant 240 : index
    %172 = vector.load %arg9[%c0_109, %c0_110, %c240] : memref<1x8x256xf32, #tpu.memory_space<vmem>>, vector<1x8x16xf32>
    %173 = vector.shape_cast %172 : vector<1x8x16xf32> to vector<8x16xf32>
    %174 = vector.shape_cast %171 : vector<8x16xf32> to vector<1x8x16xf32>
    tpu.vector_store %arg9[%c0_109, %c0_110, %c240], %174 {strides = array<i32>} : memref<1x8x256xf32, #tpu.memory_space<vmem>>, vector<1x8x16xf32>,
    return
  }
  func.func @transform_0(%arg0: i32) -> (i32, i32, i32) {
    %c0_i32 = arith.constant 0 : i32
    %c0_i32_0 = arith.constant 0 : i32
    %c0_i32_1 = arith.constant 0 : i32
    return %arg0, %c0_i32, %c0_i32_0 : i32, i32, i32
  }
  func.func @transform_1(%arg0: i32) -> (i32, i32) {
    %c0_i32 = arith.constant 0 : i32
    %c0_i32_0 = arith.constant 0 : i32
    %c0_i32_1 = arith.constant 0 : i32
    return %c0_i32, %c0_i32_0 : i32, i32
  }
  func.func @transform_2(%arg0: i32) -> (i32, i32, i32) {
    %c0_i32 = arith.constant 0 : i32
    %c0_i32_0 = arith.constant 0 : i32
    %c0_i32_1 = arith.constant 0 : i32
    %c0_i32_2 = arith.constant 0 : i32
    return %c0_i32, %c0_i32_0, %c0_i32_1 : i32, i32, i32
  }
  func.func @transform_3(%arg0: i32) -> (i32, i32) {
    %c0_i32 = arith.constant 0 : i32
    %c0_i32_0 = arith.constant 0 : i32
    %c0_i32_1 = arith.constant 0 : i32
    return %c0_i32, %c0_i32_0 : i32, i32
  }
  func.func @transform_4(%arg0: i32) -> (i32, i32) {
    %c0_i32 = arith.constant 0 : i32
    %c0_i32_0 = arith.constant 0 : i32
    %c0_i32_1 = arith.constant 0 : i32
    return %c0_i32, %c0_i32_0 : i32, i32
  }
  func.func @transform_5(%arg0: i32) -> (i32, i32) {
    %c0_i32 = arith.constant 0 : i32
    %c0_i32_0 = arith.constant 0 : i32
    %c0_i32_1 = arith.constant 0 : i32
    return %c0_i32, %c0_i32_0 : i32, i32
  }
  func.func @transform_6(%arg0: i32) -> (i32, i32, i32) {
    %c0_i32 = arith.constant 0 : i32
    %c0_i32_0 = arith.constant 0 : i32
    %c0_i32_1 = arith.constant 0 : i32
    %c0_i32_2 = arith.constant 0 : i32
    return %c0_i32, %c0_i32_0, %c0_i32_1 : i32, i32, i32
  }
  func.func @transform_7(%arg0: i32) -> (i32, i32) {
    %c0_i32 = arith.constant 0 : i32
    %c0_i32_0 = arith.constant 0 : i32
    %c0_i32_1 = arith.constant 0 : i32
    return %c0_i32, %c0_i32_0 : i32, i32
  }
  func.func @transform_8(%arg0: i32) -> (i32, i32, i32) {
    %c0_i32 = arith.constant 0 : i32
    %c0_i32_0 = arith.constant 0 : i32
    %c0_i32_1 = arith.constant 0 : i32
    return %arg0, %c0_i32, %c0_i32_0 : i32, i32, i32
  }
}

</mosaic_0001>

<bundles_post_ra>
// kernel: resnet_block_pallas.1
= control target key start
LH: loop header
LB: loop body
LE: loop exit
PB: predicated region body
PF: predicated region fallthrough
CT: control target
= control target key end

     0   :  { %s2896_s27 = smov 0   ;;  %s3241_s0 = inlined_call_operand.vmem [shape: bf16[2,8,432], index: 0, kind: input, shape index: {}]   ;;  %s3242_s1 = inlined_call_operand.vmem [shape: f32[1,362], index: 1, kind: input, shape index: {}]   ;;  %s3243_s2 = inlined_call_operand.vmem [shape: bf16[9,8,8], index: 2, kind: input, shape index: {}]   ;;  %s3244_s3 = inlined_call_operand.vmem [shape: f32[8,1], index: 3, kind: input, shape index: {}]   ;;  %s3245_s4 = inlined_call_operand.vmem [shape: bf16[8,8], index: 4, kind: input, shape index: {}]   ;;  %s3246_s5 = inlined_call_operand.vmem [shape: f32[8,1], index: 5, kind: input, shape index: {}]   ;;  %s3247_s6 = inlined_call_operand.vmem [shape: bf16[9,8,8], index: 6, kind: input, shape index: {}]   ;;  %s3248_s7 = inlined_call_operand.vmem [shape: f32[8,1], index: 7, kind: input, shape index: {}]   ;;  %s3249_s8 = inlined_call_operand.vmem [shape: f32[2,8,256], index: 8, kind: output, shape index: {}]  }
   0x1 LB: > { %s2525_s28 = sadd.s32 4294967295, %s2818_s27   ;;  %p2529_p0 = scmp.ge.s32.totalorder %s2818_s27, 1  ;;  %s2818_s27 = sphi %s2896_s27, %s18_s27  }
   0x2   : > { %p262_p1 = scmp.lt.s32.totalorder %s2818_s27, 3 }
   0x4   : > { %p263_p2 = pnand %p2529_p0, %p262_p1 }
   0x5   : > { %p296_p3 = scmp.lt.s32.totalorder (!%p263_p2), %s2525_s28, 1  ;;  %s2823_s11 = smov (!%p263_p2), 111  }
   0x6   : > { %266 = sbr.rel (%p263_p2) target bundleno = 945 (0x3b1), region = 52  ;;  %s2824_s12 = smov (!%p263_p2), 112  }
   0x7   : > { %s2825_s13 = smov (!%p263_p2), 110   ;;  %s2826_s14 = smov (!%p263_p2), 94  }
   0x8   : > { %s2827_s15 = smov (!%p263_p2), 93   ;;  %s2828_s16 = smov (!%p263_p2), 92  }
   0x9   : > { %s2829_s17 = smov (!%p263_p2), 76   ;;  %s2830_s18 = smov (!%p263_p2), 75  }
   0xa   : > { %s2831_s19 = smov (!%p263_p2), 74   ;;  %s2832_s9 = smov (!%p263_p2), 127  }
   0xb   : > { %v2820_v0 = vmov 0.0   ;;  %vm2821_vm0 = vmmov 0   ;;  %s3251_s28 = smov (!%p296_p3, %s2525_s28), 1  ;;  %v2822_v1 = vmov 0   ;;  %v1296_v8 = vld [vmem:[%s3244_s3] sm:$0xff]  ;;  %vm334_vm1 = vcmask 1043456  }
   0xc   : > { %2653 = vmatprep.subr.bf16.mxu1 %v2820_v0  ;;  %2655 = vmatprep.mubr.msk.bf16.mxu1 %vm2821_vm0, %v2820_v0  ;;  %s2613_s29 = sshll.u32 %s3251_s28, 4  ;;  %v2534_v12 = vld [vmem:[%s3243_s2 + $0x4] sm:$0xf]  ;;  %vm330_vm2 = vcmask 64512   ;;  %vm327_vm3 = vcmask 908288   ;;  %vm431_vm4 = vcmask 916480  }
   0xd   : > { %376 = vmatprep.mubr.bf16.mxu0 %v2822_v1  ;;  %2806 = vset.pattern.permute.xlu1 %v2822_v1  ;;  %s300_s10 = scalar_lea.vmem %s3241_s0, %s2613_s29  ;;  %vm535_vm5 = vcmask 900096   ;;  %v310_v24 = vld [vmem:[%s3243_s2] sm:$0xf]  ;;  %vm646_vm6 = vcmask 769024   ;;  %v2544_v33 = vld [vmem:[%s3243_s2 + $0x8] sm:$0xf] }
   0xe   : > { %2807 = vset.pattern.permute.xlu0 %v2822_v1  ;;  %v308_v2 = vld [vmem:[%s300_s10 + $0x8] sm:$0xff]  ;;  %v307_v3 = vld [vmem:[%s300_s10] sm:$0xff]  ;;  %vm756_vm7 = vcmask 760832   ;;  %vm866_vm8 = vcmask 752640   ;;  %v2553_v53 = vld [vmem:[%s3243_s2 + $0x10] sm:$0xf] }
   0xf   : > { %v2537_v4 = vcombine.low %v308_v2, %v308_v2  ;;  %v2535_v5 = vcombine.low %v307_v3, %v307_v3  ;;  %v2536_v6 = vcombine.high %v307_v3, %v307_v3  ;;  %v2549_v7 = vcombine.high %v308_v2, %v308_v2  ;;  %v2548_v43 = vld [vmem:[%s3243_s2 + $0xc] sm:$0xf]  ;;  %v2557_v63 = vld [vmem:[%s3243_s2 + $0x14] sm:$0xf]  ;;  %s2833_s10 = smov 126   ;;  %s2838_s22 = smov 83  }
  0x10   : > { %vm976_vm9 = vcmask 621568   ;;  %vm1086_vm10 = vcmask 613376   ;;  %vm1196_vm11 = vcmask 605184   ;;  %vm1436_vm12 = vcmask 1039360   ;;  %s2839_s23 = smov 81   ;;  %s2840_s24 = smov 107  }
  0x11   : > { %325 = vrot.lane.b32.xlu1 %v2537_v4, %s2823_s11  ;;  %321 = vrot.lane.b32.xlu0 %v2535_v5, %s2823_s11  ;;  %vm1633_vm13 = vcmask 1031168   ;;  %vm1846_vm14 = vcmask 891904   ;;  %vm1953_vm15 = vcmask 883712   ;;  %s2841_s25 = smov 97   ;;  %s2842_s26 = smov 105  }
  0x12   : > { %s2843_s30 = smov 103  }
  0x15   : > { %425 = vrot.lane.b32.xlu1 %v2535_v5, %s2824_s12  ;;  %323 = vrot.lane.b32.xlu0 %v2536_v6, %s2823_s11  ;;  %s2834_s11 = smov 109  }
  0x19   : > { %429 = vrot.lane.b32.xlu1 %v2537_v4, %s2824_s12  ;;  %427 = vrot.lane.b32.xlu0 %v2536_v6, %s2824_s12  ;;  %s2835_s12 = smov 108  }
  0x1d   : > { %529 = vrot.lane.b32.xlu0 %v2535_v5, %s2825_s13  ;;  %531 = vrot.lane.b32.xlu1 %v2536_v6, %s2825_s13 }
  0x21   : > { %533 = vrot.lane.b32.xlu0 %v2537_v4, %s2825_s13  ;;  %638 = vrot.lane.b32.xlu1 %v2535_v5, %s2826_s14 }
  0x25   : > { %640 = vrot.lane.b32.xlu0 %v2536_v6, %s2826_s14  ;;  %642 = vrot.lane.b32.xlu1 %v2537_v4, %s2826_s14 }
  0x29   : > { %644 = vrot.lane.b32.xlu0 %v2549_v7, %s2826_s14  ;;  %748 = vrot.lane.b32.xlu1 %v2535_v5, %s2827_s15  ;;  %s2836_s14 = smov 91  }
  0x2d   : > { %750 = vrot.lane.b32.xlu0 %v2536_v6, %s2827_s15  ;;  %752 = vrot.lane.b32.xlu1 %v2537_v4, %s2827_s15 }
  0x31   : > { %754 = vrot.lane.b32.xlu0 %v2549_v7, %s2827_s15  ;;  %858 = vrot.lane.b32.xlu1 %v2535_v5, %s2828_s16 }
  0x35   : > { %860 = vrot.lane.b32.xlu0 %v2536_v6, %s2828_s16  ;;  %862 = vrot.lane.b32.xlu1 %v2537_v4, %s2828_s16 }
  0x39   : > { %864 = vrot.lane.b32.xlu0 %v2549_v7, %s2828_s16  ;;  %968 = vrot.lane.b32.xlu1 %v2535_v5, %s2829_s17 }
  0x3d   : > { %970 = vrot.lane.b32.xlu0 %v2536_v6, %s2829_s17  ;;  %972 = vrot.lane.b32.xlu1 %v2537_v4, %s2829_s17 }
  0x41   : > { %974 = vrot.lane.b32.xlu0 %v2549_v7, %s2829_s17  ;;  %1078 = vrot.lane.b32.xlu1 %v2535_v5, %s2830_s18  ;;  %s2849_s17 = smov 79  }
  0x45   : > { %1080 = vrot.lane.b32.xlu0 %v2536_v6, %s2830_s18  ;;  %1082 = vrot.lane.b32.xlu1 %v2537_v4, %s2830_s18 }
  0x49   : > { %1084 = vrot.lane.b32.xlu0 %v2549_v7, %s2830_s18  ;;  %1188 = vrot.lane.b32.xlu1 %v2535_v5, %s2831_s19 }
  0x4d   : > { %1190 = vrot.lane.b32.xlu0 %v2536_v6, %s2831_s19  ;;  %1192 = vrot.lane.b32.xlu1 %v2537_v4, %s2831_s19 }
  0x51   : > { %1194 = vrot.lane.b32.xlu0 %v2549_v7, %s2831_s19  ;;  %1299 = vperm.xlu1 %2806, %v1296_v8   ;;  %s3214_s19 = scalar_lea.vmem %s3249_s8, %s2613_s29 }
  0x83   : > { %v326_v9 = vpop.permute.xlu1 %325  ;;  %v322_v10 = vpop.permute.xlu0 %321 }
  0x84   : > { %v342_v11 = vsel %vm334_vm1, %v326_v9, 0 }
  0x85   : > { %2654 = vmatpush3.bf16.msra.mxu1 %v342_v11  ;;  %v2561_v11 = vld [vmem:[%s3243_s2 + $0x18] sm:$0xf] }
  0x86   : > { %2659 = vmatprep.subr.bf16.mxu1 %v2820_v0 }
  0x87   : > { %v426_v13 = vpop.permute.xlu1 %425  ;;  %v324_v14 = vpop.permute.xlu0 %323 }
  0x88   : > { %2656 = vmatmul.mubr.msk.bf16.vlgmr.msra.gmra.mxu1 %vm330_vm2, %v2534_v12  ;;  %v329_v15 = vsel %vm327_vm3, %v324_v14, %v326_v9  ;;  %v328_v16 = vsel %vm327_vm3, %v322_v10, %v324_v14  ;;  %vm2166_vm3 = vcmask 744448  }
  0x89   : > { %2538 = vmatprep.subr.msk.bf16.mxu0 %vm334_vm1, %v329_v15  ;;  %v336_v17 = vsel %vm334_vm1, %v328_v16, 0  ;;  %2661 = vmatprep.mubr.msk.bf16.mxu1 %vm2821_vm0, %v2820_v0 }
  0x8a   : > { %359 = vmatpush1.bf16.msra.mxu0 %v336_v17 }
  0x8b   : > { %v430_v18 = vpop.permute.xlu1 %429  ;;  %v428_v19 = vpop.permute.xlu0 %427 }
  0x8c   : > { %v444_v20 = vsel %vm334_vm1, %v430_v18, 0  ;;  %v432_v21 = vsel %vm431_vm4, %v426_v13, %v428_v19  ;;  %v433_v22 = vsel %vm431_vm4, %v428_v19, %v430_v18  ;;  %vm2273_vm4 = vcmask 736256  }
  0x8d   : > { %v438_v23 = vsel %vm334_vm1, %v432_v21, 0  ;;  %2539 = vmatmul.mubr.msk.bf16.vlgmr.msra.gmra.mxu0 %vm330_vm2, %v2534_v12  ;;  %2541 = vmatprep.subr.msk.bf16.mxu0 %vm334_vm1, %v433_v22  ;;  %v2565_v21 = vld [vmem:[%s3243_s2 + $0x1c] sm:$0xf] }
  0x8e   : > { %2660 = vmatpush3.bf16.msra.mxu1 %v444_v20  ;;  %461 = vmatpush1.bf16.msra.mxu0 %v438_v23 }
  0x8f   : > { %v530_v25 = vpop.permute.xlu0 %529  ;;  %v532_v26 = vpop.permute.xlu1 %531  ;;  %478 = vmatprep.mubr.bf16.mxu0 %v2822_v1  ;;  %2665 = vmatprep.subr.bf16.mxu1 %v2820_v0 }
  0x90   : > { %v536_v27 = vsel %vm535_vm5, %v530_v25, %v532_v26 }
  0x91   : > { %2662 = vmatmul.mubr.msk.bf16.vlgmr.msra.gmra.mxu1 %vm330_vm2, %v310_v24  ;;  %v542_v28 = vsel %vm334_vm1, %v536_v27, 0 }
  0x92   : > { %2667 = vmatprep.mubr.msk.bf16.mxu1 %vm2821_vm0, %v2820_v0 }
  0x93   : > { %v534_v29 = vpop.permute.xlu0 %533  ;;  %v639_v30 = vpop.permute.xlu1 %638 }
  0x94   : > { %v537_v31 = vsel %vm535_vm5, %v532_v26, %v534_v29  ;;  %v548_v32 = vsel %vm334_vm1, %v534_v29, 0 }
  0x95   : > { %2542 = vmatmul.mubr.msk.bf16.vlgmr.msra.gmra.mxu0 %vm330_vm2, %v310_v24  ;;  %2545 = vmatprep.subr.msk.bf16.mxu0 %vm334_vm1, %v537_v31 }
  0x96   : > { %2666 = vmatpush3.bf16.msra.mxu1 %v548_v32  ;;  %565 = vmatpush1.bf16.msra.mxu0 %v542_v28 }
  0x97   : > { %v641_v34 = vpop.permute.xlu0 %640  ;;  %v643_v35 = vpop.permute.xlu1 %642  ;;  %582 = vmatprep.mubr.bf16.mxu0 %v2822_v1  ;;  %2671 = vmatprep.subr.bf16.mxu1 %v2820_v0 }
  0x98   : > { %v647_v36 = vsel %vm646_vm6, %v639_v30, %v641_v34  ;;  %v648_v37 = vsel %vm646_vm6, %v641_v34, %v643_v35  ;;  %v2569_v30 = vld [vmem:[%s3243_s2 + $0x20] sm:$0xf] }
  0x99   : > { %2668 = vmatmul.mubr.msk.bf16.vlgmr.msra.gmra.mxu1 %vm330_vm2, %v2544_v33  ;;  %2550 = vmatprep.subr.msk.bf16.mxu0 %vm334_vm1, %v648_v37  ;;  %v654_v38 = vsel %vm334_vm1, %v647_v36, 0 }
  0x9a   : > { %2673 = vmatprep.mubr.msk.bf16.mxu1 %vm2821_vm0, %v2820_v0 }
  0x9b   : > { %v645_v39 = vpop.permute.xlu0 %644  ;;  %v749_v40 = vpop.permute.xlu1 %748 }
  0x9c   : > { %v649_v41 = vsel %vm646_vm6, %v643_v35, %v645_v39  ;;  %vm2411_vm6 = vcmask 654848  }
  0x9d   : > { %v660_v42 = vsel %vm334_vm1, %v649_v41, 0  ;;  %2546 = vmatmul.mubr.msk.bf16.vlgmr.msra.gmra.mxu0 %vm330_vm2, %v2544_v33 }
  0x9e   : > { %677 = vmatpush1.bf16.msra.mxu0 %v654_v38  ;;  %2672 = vmatpush3.bf16.msra.mxu1 %v660_v42 }
  0x9f   : > { %v751_v44 = vpop.permute.xlu0 %750  ;;  %v753_v45 = vpop.permute.xlu1 %752  ;;  %694 = vmatprep.mubr.bf16.mxu0 %v2822_v1  ;;  %2677 = vmatprep.subr.bf16.mxu1 %v2820_v0 }
  0xa0   : > { %v757_v46 = vsel %vm756_vm7, %v749_v40, %v751_v44  ;;  %v758_v47 = vsel %vm756_vm7, %v751_v44, %v753_v45 }
  0xa1   : > { %2674 = vmatmul.mubr.msk.bf16.vlgmr.msra.gmra.mxu1 %vm330_vm2, %v2548_v43  ;;  %2554 = vmatprep.subr.msk.bf16.mxu0 %vm334_vm1, %v758_v47  ;;  %v764_v48 = vsel %vm334_vm1, %v757_v46, 0 }
  0xa2   : > { %2679 = vmatprep.mubr.msk.bf16.mxu1 %vm2821_vm0, %v2820_v0 }
  0xa3   : > { %v755_v49 = vpop.permute.xlu0 %754  ;;  %v859_v50 = vpop.permute.xlu1 %858 }
  0xa4   : > { %v759_v51 = vsel %vm756_vm7, %v753_v45, %v755_v49  ;;  %vm2416_vm7 = vcmask 786048  }
  0xa5   : > { %v770_v52 = vsel %vm334_vm1, %v759_v51, 0  ;;  %2551 = vmatmul.mubr.msk.bf16.vlgmr.msra.gmra.mxu0 %vm330_vm2, %v2548_v43 }
  0xa6   : > { %787 = vmatpush1.bf16.msra.mxu0 %v764_v48  ;;  %2678 = vmatpush3.bf16.msra.mxu1 %v770_v52 }
  0xa7   : > { %v861_v54 = vpop.permute.xlu0 %860  ;;  %v863_v55 = vpop.permute.xlu1 %862  ;;  %804 = vmatprep.mubr.bf16.mxu0 %v2822_v1  ;;  %2683 = vmatprep.subr.bf16.mxu1 %v2820_v0 }
  0xa8   : > { %v867_v56 = vsel %vm866_vm8, %v859_v50, %v861_v54  ;;  %v868_v57 = vsel %vm866_vm8, %v861_v54, %v863_v55 }
  0xa9   : > { %2680 = vmatmul.mubr.msk.bf16.vlgmr.msra.gmra.mxu1 %vm330_vm2, %v2553_v53  ;;  %2558 = vmatprep.subr.msk.bf16.mxu0 %vm334_vm1, %v868_v57  ;;  %v874_v58 = vsel %vm334_vm1, %v867_v56, 0 }
  0xaa   : > { %2685 = vmatprep.mubr.msk.bf16.mxu1 %vm2821_vm0, %v2820_v0 }
  0xab   : > { %v865_v59 = vpop.permute.xlu0 %864  ;;  %v969_v60 = vpop.permute.xlu1 %968 }
  0xac   : > { %v869_v61 = vsel %vm866_vm8, %v863_v55, %v865_v59 }
  0xad   : > { %v880_v62 = vsel %vm334_vm1, %v869_v61, 0  ;;  %2555 = vmatmul.mubr.msk.bf16.vlgmr.msra.gmra.mxu0 %vm330_vm2, %v2553_v53 }
  0xae   : > { %897 = vmatpush1.bf16.msra.mxu0 %v874_v58  ;;  %2684 = vmatpush3.bf16.msra.mxu1 %v880_v62 }
  0xaf   : > { %v971_v2 = vpop.permute.xlu0 %970  ;;  %v973_v3 = vpop.permute.xlu1 %972  ;;  %914 = vmatprep.mubr.bf16.mxu0 %v2822_v1  ;;  %2689 = vmatprep.subr.bf16.mxu1 %v2820_v0 }
  0xb0   : > { %v977_v4 = vsel %vm976_vm9, %v969_v60, %v971_v2  ;;  %v978_v5 = vsel %vm976_vm9, %v971_v2, %v973_v3 }
  0xb1   : > { %2686 = vmatmul.mubr.msk.bf16.vlgmr.msra.gmra.mxu1 %vm330_vm2, %v2557_v63  ;;  %2562 = vmatprep.subr.msk.bf16.mxu0 %vm334_vm1, %v978_v5  ;;  %v984_v6 = vsel %vm334_vm1, %v977_v4, 0 }
  0xb2   : > { %2691 = vmatprep.mubr.msk.bf16.mxu1 %vm2821_vm0, %v2820_v0 }
  0xb3   : > { %v975_v7 = vpop.permute.xlu0 %974  ;;  %v1079_v8 = vpop.permute.xlu1 %1078 }
  0xb4   : > { %v979_v9 = vsel %vm976_vm9, %v973_v3, %v975_v7  ;;  %vm2423_vm9 = vcmask 793600  }
  0xb5   : > { %v990_v10 = vsel %vm334_vm1, %v979_v9, 0  ;;  %2559 = vmatmul.mubr.msk.bf16.vlgmr.msra.gmra.mxu0 %vm330_vm2, %v2557_v63 }
  0xb6   : > { %1007 = vmatpush1.bf16.msra.mxu0 %v984_v6  ;;  %2690 = vmatpush3.bf16.msra.mxu1 %v990_v10 }
  0xb7   : > { %v1081_v12 = vpop.permute.xlu0 %1080  ;;  %v1083_v13 = vpop.permute.xlu1 %1082  ;;  %1024 = vmatprep.mubr.bf16.mxu0 %v2822_v1  ;;  %2695 = vmatprep.subr.bf16.mxu1 %v2820_v0 }
  0xb8   : > { %v1087_v14 = vsel %vm1086_vm10, %v1079_v8, %v1081_v12  ;;  %v1088_v15 = vsel %vm1086_vm10, %v1081_v12, %v1083_v13 }
  0xb9   : > { %2692 = vmatmul.mubr.msk.bf16.vlgmr.msra.gmra.mxu1 %vm330_vm2, %v2561_v11  ;;  %2566 = vmatprep.subr.msk.bf16.mxu0 %vm334_vm1, %v1088_v15  ;;  %v1094_v16 = vsel %vm334_vm1, %v1087_v14, 0 }
  0xba   : > { %2697 = vmatprep.mubr.msk.bf16.mxu1 %vm2821_vm0, %v2820_v0 }
  0xbb   : > { %v1085_v17 = vpop.permute.xlu0 %1084  ;;  %v1189_v18 = vpop.permute.xlu1 %1188 }
  0xbc   : > { %v1089_v19 = vsel %vm1086_vm10, %v1083_v13, %v1085_v17  ;;  %vm2426_vm10 = vcmask 917248  }
  0xbd   : > { %v1100_v20 = vsel %vm334_vm1, %v1089_v19, 0  ;;  %2563 = vmatmul.mubr.msk.bf16.vlgmr.msra.gmra.mxu0 %vm330_vm2, %v2561_v11 }
  0xbe   : > { %1117 = vmatpush1.bf16.msra.mxu0 %v1094_v16  ;;  %2696 = vmatpush3.bf16.msra.mxu1 %v1100_v20 }
  0xbf   : > { %v1191_v22 = vpop.permute.xlu0 %1190  ;;  %v1193_v23 = vpop.permute.xlu1 %1192  ;;  %1134 = vmatprep.mubr.bf16.mxu0 %v2822_v1  ;;  %2701 = vmatprep.subr.bf16.mxu1 %v2820_v0 }
  0xc0   : > { %v1197_v24 = vsel %vm1196_vm11, %v1189_v18, %v1191_v22  ;;  %v1198_v25 = vsel %vm1196_vm11, %v1191_v22, %v1193_v23  ;;  %v1341_v31 = vsel %vm334_vm1, %v1193_v23, 0 }
  0xc1   : > { %2698 = vmatmul.mubr.msk.bf16.vlgmr.msra.gmra.mxu1 %vm330_vm2, %v2565_v21  ;;  %2570 = vmatprep.subr.msk.bf16.mxu0 %vm334_vm1, %v1198_v25  ;;  %v1204_v26 = vsel %vm334_vm1, %v1197_v24, 0 }
  0xc2   : > { %2703 = vmatprep.mubr.msk.bf16.mxu1 %vm2821_vm0, %v2820_v0 }
  0xc3   : > { %v1195_v27 = vpop.permute.xlu0 %1194 }
  0xc4   : > { %v1199_v28 = vsel %vm1196_vm11, %v1193_v23, %v1195_v27  ;;  %vm2431_vm11 = vcmask 1048448  }
  0xc5   : > { %v1210_v29 = vsel %vm334_vm1, %v1199_v28, 0  ;;  %2567 = vmatmul.mubr.msk.bf16.vlgmr.msra.gmra.mxu0 %vm330_vm2, %v2565_v21 }
  0xc6   : > { %1227 = vmatpush1.bf16.msra.mxu0 %v1204_v26  ;;  %2702 = vmatpush3.bf16.msra.mxu1 %v1210_v29 }
  0xc7   : > { %2573 = vmatprep.subr.msk.bf16.mxu0 %vm334_vm1, %v1198_v25  ;;  %2707 = vmatprep.subr.bf16.mxu1 %v2820_v0 }
  0xc8   : > { %1244 = vmatprep.mubr.bf16.mxu0 %v2822_v1 }
  0xc9   : > { %2704 = vmatmul.mubr.msk.bf16.vlgmr.msra.gmra.mxu1 %vm330_vm2, %v2569_v30 }
  0xca   : > { %2708 = vmatpush3.bf16.msra.mxu1 %v1341_v31  ;;  %2709 = vmatprep.mubr.msk.bf16.mxu1 %vm2821_vm0, %v2820_v0 }
  0xcb   : > { %2713 = vmatprep.subr.bf16.mxu1 %v2820_v0 }
  0xcd   : > { %2571 = vmatmul.mubr.msk.bf16.vlgmr.msra.gmra.mxu0 %vm330_vm2, %v2569_v30 }
  0xce   : > { %1358 = vmatpush1.bf16.msra.mxu0 %v1204_v26  ;;  %1375 = vmatprep.mubr.bf16.mxu0 %v2822_v1 }
 0x148   : > { %v419_v32 = vpop.f32.mrf.mxu1 }
 0x14a   : > { %v2657_v33 = vpop.f32.mrf.mxu1 }
 0x14c   : > { %v422_v34 = vpop.f32.mrf.mxu1 }
 0x14d   : > { %v378_v35 = vpop.f32.mrf.mxu0 }
 0x14e   : > { %v2658_v36 = vpop.f32.mrf.mxu1 }
 0x14f   : > { %v380_v37 = vpop.f32.mrf.mxu0 }
 0x151   : > { %v521_v38 = vpop.f32.mrf.mxu1  ;;  %v382_v39 = vpop.f32.mrf.mxu0 }
 0x152   : > { %v522_v20 = vadd.f32 %v521_v38, %v419_v32  ;;  %v1309_v32 = vlaneseq }
 0x153   : > { %v2663_v40 = vpop.f32.mrf.mxu1  ;;  %v383_v41 = vpop.f32.mrf.mxu0 }
 0x155   : > { %v524_v42 = vpop.f32.mrf.mxu1  ;;  %v480_v43 = vpop.f32.mrf.mxu0 }
 0x156   : > { %v481_v26 = vadd.f32 %v480_v43, %v378_v35  ;;  %v1330_v35 = vld [vmem:[%s3245_s4] sm:$0xf] }
 0x157   : > { %v2664_v44 = vpop.f32.mrf.mxu1  ;;  %v482_v45 = vpop.f32.mrf.mxu0  ;;  %2574 = vmatmul.mubr.msk.bf16.vlgmr.msra.gmra.mxu0 %vm330_vm2, %v1330_v35  ;;  %2710 = vmatmul.mubr.msk.bf16.vlgmr.msra.gmra.mxu1 %vm330_vm2, %v1330_v35 }
 0x158   : > { %v483_v30 = vadd.f32 %v482_v45, %v380_v37  ;;  %2715 = vmatprep.mubr.msk.bf16.mxu1 %vm2821_vm0, %v2820_v0  ;;  %1483 = vmatprep.mubr.bf16.mxu0 %v2822_v1 }
 0x159   : > { %v625_v46 = vpop.f32.mrf.mxu1  ;;  %v484_v47 = vpop.f32.mrf.mxu0 }
 0x15a   : > { %v633_v23 = vadd.f32 %v625_v46, %v522_v20 }
 0x15b   : > { %v485_v48 = vpop.f32.mrf.mxu0  ;;  %v2669_v49 = vpop.f32.mrf.mxu1 }
 0x15d   : > { %v584_v50 = vpop.f32.mrf.mxu0  ;;  %v628_v51 = vpop.f32.mrf.mxu1 }
 0x15e   : > { %v631_v31 = vadd.f32 %v584_v50, %v481_v26 }
 0x15f   : > { %v586_v52 = vpop.f32.mrf.mxu0  ;;  %v2670_v53 = vpop.f32.mrf.mxu1 }
 0x160   : > { %v632_v39 = vadd.f32 %v586_v52, %v483_v30  ;;  %v1310_v52 = vshrl.u32 %v1309_v32, 7 }
 0x161   : > { %v588_v54 = vpop.f32.mrf.mxu0  ;;  %v737_v55 = vpop.f32.mrf.mxu1 }
 0x162   : > { %v745_v27 = vadd.f32 %v737_v55, %v633_v23 }
 0x163   : > { %v589_v56 = vpop.f32.mrf.mxu0  ;;  %v2675_v57 = vpop.f32.mrf.mxu1 }
 0x164   : > { %v1300_v56 = vpop.permute.xlu1 %1299 }
 0x165   : > { %v696_v58 = vpop.f32.mrf.mxu0  ;;  %v740_v59 = vpop.f32.mrf.mxu1 }
 0x166   : > { %v743_v40 = vadd.f32 %v696_v58, %v631_v31 }
 0x167   : > { %v698_v60 = vpop.f32.mrf.mxu0  ;;  %v2676_v61 = vpop.f32.mrf.mxu1 }
 0x168   : > { %v744_v38 = vadd.f32 %v698_v60, %v632_v39  ;;  %v1311_v61 = vsub.s32 0, %v1310_v52 }
 0x169   : > { %v700_v62 = vpop.f32.mrf.mxu0  ;;  %v847_v63 = vpop.f32.mrf.mxu1 }
 0x16a   : > { %v855_v33 = vadd.f32 %v847_v63, %v745_v27  ;;  %v1319_v62 = vsub.s32 2, %v1310_v52  ;;  %v2372_v27 = vld [vmem:[%s3248_s7] sm:$0xff] }
 0x16b   : > { %v701_v2 = vpop.f32.mrf.mxu0  ;;  %v2681_v3 = vpop.f32.mrf.mxu1 }
 0x16d   : > { %v806_v4 = vpop.f32.mrf.mxu0  ;;  %v850_v5 = vpop.f32.mrf.mxu1 }
 0x16e   : > { %v853_v47 = vadd.f32 %v806_v4, %v743_v40  ;;  %v309_v4 = vld [vmem:[%s3242_s1] sm:$0x7] }
 0x16f   : > { %v808_v6 = vpop.f32.mrf.mxu0  ;;  %v2682_v7 = vpop.f32.mrf.mxu1 }
 0x170   : > { %v854_v37 = vadd.f32 %v808_v6, %v744_v38  ;;  %v1315_v7 = vsub.s32 1, %v1310_v52 }
 0x171   : > { %v810_v8 = vpop.f32.mrf.mxu0  ;;  %v957_v9 = vpop.f32.mrf.mxu1 }
 0x172   : > { %v965_v41 = vadd.f32 %v957_v9, %v855_v33 }
 0x173   : > { %v811_v10 = vpop.f32.mrf.mxu0  ;;  %v2687_v11 = vpop.f32.mrf.mxu1 }
 0x174   : > { %v1312_v11 = vrot.slane %v309_v4, %v1311_v61 }
 0x175   : > { %v916_v12 = vpop.f32.mrf.mxu0  ;;  %v960_v13 = vpop.f32.mrf.mxu1 }
 0x176   : > { %v963_v45 = vadd.f32 %v916_v12, %v853_v47  ;;  %v1320_v13 = vrot.slane %v309_v4, %v1319_v62  ;;  %v2587_v62 = vld [vmem:[%s3247_s6 + $0xc] sm:$0xf] }
 0x177   : > { %v918_v14 = vpop.f32.mrf.mxu0  ;;  %v2688_v15 = vpop.f32.mrf.mxu1 }
 0x178   : > { %v964_v53 = vadd.f32 %v918_v14, %v854_v37 }
 0x179   : > { %v920_v16 = vpop.f32.mrf.mxu0  ;;  %v1067_v17 = vpop.f32.mrf.mxu1 }
 0x17a   : > { %v1075_v46 = vadd.f32 %v1067_v17, %v965_v41  ;;  %v2576_v41 = vld [vmem:[%s3247_s6 + $0x4] sm:$0xf] }
 0x17b   : > { %v921_v18 = vpop.f32.mrf.mxu0  ;;  %v2693_v19 = vpop.f32.mrf.mxu1 }
 0x17c   : > { %v1316_v18 = vrot.slane %v309_v4, %v1315_v7 }
 0x17d   : > { %v1026_v21 = vpop.f32.mrf.mxu0  ;;  %v1070_v22 = vpop.f32.mrf.mxu1 }
 0x17e   : > { %v1073_v54 = vadd.f32 %v1026_v21, %v963_v45 }
 0x17f   : > { %v1028_v24 = vpop.f32.mrf.mxu0  ;;  %v2694_v25 = vpop.f32.mrf.mxu1 }
 0x180   : > { %v1074_v59 = vadd.f32 %v1028_v24, %v964_v53 }
 0x181   : > { %v1030_v28 = vpop.f32.mrf.mxu0  ;;  %v1177_v29 = vpop.f32.mrf.mxu1 }
 0x182   : > { %v1185_v49 = vadd.f32 %v1177_v29, %v1075_v46  ;;  %v1331_v28 = vld [vmem:[%s3246_s5] sm:$0xff] }
 0x183   : > { %v1031_v34 = vpop.f32.mrf.mxu0  ;;  %v2699_v36 = vpop.f32.mrf.mxu1 }
 0x185   : > { %v1136_v42 = vpop.f32.mrf.mxu0  ;;  %v1180_v44 = vpop.f32.mrf.mxu1 }
 0x186   : > { %v1183_v60 = vadd.f32 %v1136_v42, %v1073_v54  ;;  %v2583_v54 = vld [vmem:[%s3247_s6 + $0x8] sm:$0xf] }
 0x187   : > { %v1138_v43 = vpop.f32.mrf.mxu0  ;;  %v2700_v48 = vpop.f32.mrf.mxu1 }
 0x188   : > { %v1184_v3 = vadd.f32 %v1138_v43, %v1074_v59  ;;  %v1424_v43 = vld [vmem:[%s3247_s6] sm:$0xf] }
 0x189   : > { %v1140_v50 = vpop.f32.mrf.mxu0  ;;  %v1287_v51 = vpop.f32.mrf.mxu1 }
 0x18a   : > { %v1295_v55 = vadd.f32 %v1287_v51, %v1185_v49 }
 0x18b   : > { %v1141_v57 = vpop.f32.mrf.mxu0  ;;  %v2705_v58 = vpop.f32.mrf.mxu1 }
 0x18c   : > { %v1304_v5 = vadd.f32 %v1300_v56, %v1295_v55 }
 0x18d   : > { %v1246_v63 = vpop.f32.mrf.mxu0  ;;  %v1290_v2 = vpop.f32.mrf.mxu1 }
 0x18e   : > { %v1293_v6 = vadd.f32 %v1246_v63, %v1183_v60  ;;  %v1307_v15 = vmax.f32 %v1304_v5, 0.0 }
 0x18f   : > { %v1248_v8 = vpop.f32.mrf.mxu0  ;;  %v2706_v9 = vpop.f32.mrf.mxu1 }
 0x190   : > { %v1302_v10 = vadd.f32 %v1300_v56, %v1293_v6  ;;  %v1294_v12 = vadd.f32 %v1248_v8, %v1184_v3  ;;  %v1326_v22 = vmul.f32 %v1320_v13, %v1307_v15  ;;  %v2591_v8 = vld [vmem:[%s3247_s6 + $0x10] sm:$0xf]  ;;  %v2595_v15 = vld [vmem:[%s3247_s6 + $0x14] sm:$0xf] }
 0x191   : > { %v1250_v14 = vpop.f32.mrf.mxu0 }
 0x192   : > { %v1305_v16 = vmax.f32 %v1302_v10, 0.0  ;;  %v1303_v17 = vadd.f32 %v1300_v56, %v1294_v12  ;;  %v1329_v26 = vpack.c.bf16 %v1326_v22, %v1326_v22  ;;  %v2599_v22 = vld [vmem:[%s3247_s6 + $0x18] sm:$0xf] }
 0x193   : > { %v1251_v19 = vpop.f32.mrf.mxu0 }
 0x194   : > { %v1324_v20 = vmul.f32 %v1312_v11, %v1305_v16  ;;  %v1306_v21 = vmax.f32 %v1303_v17, 0.0  ;;  %v1542_v44 = vsel %vm334_vm1, %v1329_v26, 0 }
 0x196   : > { %v1327_v23 = vpack.c.bf16 %v1324_v20, %v1324_v20  ;;  %v1325_v24 = vmul.f32 %v1316_v18, %v1306_v21 }
 0x198   : > { %v1328_v25 = vpack.c.bf16 %v1325_v24, %v1325_v24  ;;  %1430 = vrot.lane.b32.xlu0 %v1327_v23, %s2832_s9  ;;  %v1536_v38 = vsel %vm334_vm1, %v1327_v23, 0 }
 0x19a   : > { %1432 = vrot.lane.b32.xlu1 %v1328_v25, %s2832_s9 }
 0x19c   : > { %1434 = vrot.lane.b32.xlu0 %v1329_v26, %s2832_s9  ;;  %s2845_s9 = smov 89  }
 0x19e   : > { %1627 = vrot.lane.b32.xlu1 %v1327_v23, %s2833_s10 }
 0x1a0   : > { %1629 = vrot.lane.b32.xlu0 %v1328_v25, %s2833_s10 }
 0x1a2   : > { %1631 = vrot.lane.b32.xlu1 %v1329_v26, %s2833_s10  ;;  %s2846_s10 = smov 99  }
 0x1a4   : > { %1734 = vrot.lane.b32.xlu0 %v1327_v23, %s2825_s13 }
 0x1a6   : > { %1736 = vrot.lane.b32.xlu1 %v1328_v25, %s2825_s13 }
 0x1a8   : > { %1738 = vrot.lane.b32.xlu0 %v1329_v26, %s2825_s13  ;;  %s2837_s13 = smov 90  }
 0x1aa   : > { %1840 = vrot.lane.b32.xlu1 %v1327_v23, %s2834_s11 }
 0x1ac   : > { %1842 = vrot.lane.b32.xlu0 %v1328_v25, %s2834_s11 }
 0x1ae   : > { %1844 = vrot.lane.b32.xlu1 %v1329_v26, %s2834_s11 }
 0x1b0   : > { %1947 = vrot.lane.b32.xlu0 %v1327_v23, %s2835_s12 }
 0x1b2   : > { %1949 = vrot.lane.b32.xlu1 %v1328_v25, %s2835_s12 }
 0x1b4   : > { %1951 = vrot.lane.b32.xlu0 %v1329_v26, %s2835_s12  ;;  %s2847_s12 = smov 87  }
 0x1b6   : > { %2054 = vrot.lane.b32.xlu1 %v1327_v23, %s2828_s16 }
 0x1b8   : > { %2056 = vrot.lane.b32.xlu0 %v1328_v25, %s2828_s16 }
 0x1ba   : > { %2058 = vrot.lane.b32.xlu1 %v1329_v26, %s2828_s16 }
 0x1bc   : > { %2160 = vrot.lane.b32.xlu0 %v1327_v23, %s2836_s14 }
 0x1be   : > { %2162 = vrot.lane.b32.xlu1 %v1328_v25, %s2836_s14 }
 0x1c0   : > { %2164 = vrot.lane.b32.xlu0 %v1329_v26, %s2836_s14 }
 0x1c2   : > { %2267 = vrot.lane.b32.xlu1 %v1327_v23, %s2837_s13 }
 0x1c4   : > { %2269 = vrot.lane.b32.xlu0 %v1328_v25, %s2837_s13 }
 0x1c6   : > { %2271 = vrot.lane.b32.xlu1 %v1329_v26, %s2837_s13  ;;  %s2848_s13 = smov 85  }
 0x1c8   : > { %1334 = vperm.xlu0 %2807, %v1331_v28  }
 0x1ca   : > { %2375 = vperm.xlu1 %2806, %v2372_v27  }
 0x20a   : > { %v1431_v29 = vpop.permute.xlu0 %1430 }
 0x20c   : > { %v1433_v30 = vpop.permute.xlu1 %1432 }
 0x20d   : > { %v1437_v31 = vsel %vm1436_vm12, %v1431_v29, %v1433_v30 }
 0x20e   : > { %v1435_v33 = vpop.permute.xlu0 %1434  ;;  %v1443_v39 = vsel %vm334_vm1, %v1437_v31, 0  ;;  %v2603_v31 = vld [vmem:[%s3247_s6 + $0x1c] sm:$0xf] }
 0x20f   : > { %v1438_v34 = vsel %vm1436_vm12, %v1433_v30, %v1435_v33  ;;  %v1449_v36 = vsel %vm334_vm1, %v1435_v33, 0 }
 0x210   : > { %v1628_v40 = vpop.permute.xlu1 %1627  ;;  %2577 = vmatprep.subr.msk.bf16.mxu0 %vm334_vm1, %v1438_v34  ;;  %2714 = vmatpush3.bf16.msra.mxu1 %v1449_v36 }
 0x211   : > { %1466 = vmatpush1.bf16.msra.mxu0 %v1443_v39  ;;  %2719 = vmatprep.subr.bf16.mxu1 %v2820_v0 }
 0x212   : > { %2580 = vmatprep.subr.msk.bf16.mxu0 %vm334_vm1, %v1328_v25  ;;  %v1630_v42 = vpop.permute.xlu0 %1629 }
 0x213   : > { %2716 = vmatmul.mubr.msk.bf16.vlgmr.msra.gmra.mxu1 %vm330_vm2, %v2576_v41  ;;  %v1634_v48 = vsel %vm1633_vm13, %v1628_v40, %v1630_v42 }
 0x214   : > { %v1632_v32 = vpop.permute.xlu1 %1631  ;;  %2578 = vmatmul.mubr.msk.bf16.vlgmr.msra.gmra.mxu0 %vm330_vm2, %v2576_v41  ;;  %2720 = vmatpush3.bf16.msra.mxu1 %v1542_v44  ;;  %v1640_v50 = vsel %vm334_vm1, %v1634_v48, 0 }
 0x215   : > { %v1635_v47 = vsel %vm1633_vm13, %v1630_v42, %v1632_v32  ;;  %1559 = vmatpush1.bf16.msra.mxu0 %v1536_v38  ;;  %2721 = vmatprep.mubr.msk.bf16.mxu1 %vm2821_vm0, %v2820_v0  ;;  %v1646_v45 = vsel %vm334_vm1, %v1632_v32, 0  ;;  %v2607_v38 = vld [vmem:[%s3247_s6 + $0x20] sm:$0xf] }
 0x216   : > { %2584 = vmatprep.subr.msk.bf16.mxu0 %vm334_vm1, %v1635_v47  ;;  %v1735_v46 = vpop.permute.xlu0 %1734  ;;  %2725 = vmatprep.subr.bf16.mxu1 %v2820_v0 }
 0x217   : > { %1576 = vmatprep.mubr.bf16.mxu0 %v2822_v1  ;;  %v3182_v29 = vpop.f32.mrf.mxu0  ;;  %v3184_v30 = vpop.f32.mrf.mxu1 }
 0x218   : > { %v1737_v35 = vpop.permute.xlu1 %1736 }
 0x219   : > { %v1740_v55 = vsel %vm535_vm5, %v1735_v46, %v1737_v35  ;;  %v3189_v34 = vpop.f32.mrf.mxu0  ;;  %v2711_v36 = vpop.f32.mrf.mxu1 }
 0x21a   : > { %v1739_v37 = vpop.permute.xlu0 %1738  ;;  %v1746_v58 = vsel %vm334_vm1, %v1740_v55, 0 }
 0x21b   : > { %v1741_v49 = vsel %vm535_vm5, %v1737_v35, %v1739_v37  ;;  %2722 = vmatmul.mubr.msk.bf16.vlgmr.msra.gmra.mxu1 %vm330_vm2, %v1424_v43  ;;  %v1752_v57 = vsel %vm334_vm1, %v1739_v37, 0  ;;  %v1381_v40 = vpop.f32.mrf.mxu0  ;;  %v1421_v41 = vpop.f32.mrf.mxu1  ;;  %vm2406_vm5 = vcmask 523648  }
 0x21c   : > { %2726 = vmatpush3.bf16.msra.mxu1 %v1646_v45  ;;  %v1841_v51 = vpop.permute.xlu1 %1840  ;;  %2581 = vmatmul.mubr.msk.bf16.vlgmr.msra.gmra.mxu0 %vm330_vm2, %v1424_v43 }
 0x21d   : > { %1663 = vmatpush1.bf16.msra.mxu0 %v1640_v50  ;;  %2727 = vmatprep.mubr.msk.bf16.mxu1 %vm2821_vm0, %v2820_v0  ;;  %v1382_v44 = vpop.f32.mrf.mxu0  ;;  %v2712_v32 = vpop.f32.mrf.mxu1 }
 0x21e   : > { %2588 = vmatprep.subr.msk.bf16.mxu0 %vm334_vm1, %v1741_v49  ;;  %v1843_v52 = vpop.permute.xlu0 %1842  ;;  %2731 = vmatprep.subr.bf16.mxu1 %v2820_v0 }
 0x21f   : > { %1680 = vmatprep.mubr.bf16.mxu0 %v2822_v1  ;;  %v1847_v63 = vsel %vm1846_vm14, %v1841_v51, %v1843_v52 }
 0x220   : > { %v1845_v53 = vpop.permute.xlu1 %1844  ;;  %v1853_v4 = vsel %vm334_vm1, %v1847_v63, 0 }
 0x221   : > { %v1848_v60 = vsel %vm1846_vm14, %v1843_v52, %v1845_v53  ;;  %v1859_v3 = vsel %vm334_vm1, %v1845_v53, 0 }
 0x222   : > { %v1948_v56 = vpop.permute.xlu0 %1947 }
 0x223   : > { %2728 = vmatmul.mubr.msk.bf16.vlgmr.msra.gmra.mxu1 %vm330_vm2, %v2583_v54 }
 0x224   : > { %2732 = vmatpush3.bf16.msra.mxu1 %v1752_v57  ;;  %v1950_v59 = vpop.permute.xlu1 %1949  ;;  %2585 = vmatmul.mubr.msk.bf16.vlgmr.msra.gmra.mxu0 %vm330_vm2, %v2583_v54 }
 0x225   : > { %1769 = vmatpush1.bf16.msra.mxu0 %v1746_v58  ;;  %2733 = vmatprep.mubr.msk.bf16.mxu1 %vm2821_vm0, %v2820_v0  ;;  %v1954_v9 = vsel %vm1953_vm15, %v1948_v56, %v1950_v59 }
 0x226   : > { %2592 = vmatprep.subr.msk.bf16.mxu0 %vm334_vm1, %v1848_v60  ;;  %2737 = vmatprep.subr.bf16.mxu1 %v2820_v0  ;;  %v1952_v61 = vpop.permute.xlu0 %1951  ;;  %v1960_v11 = vsel %vm334_vm1, %v1954_v9, 0 }
 0x227   : > { %1786 = vmatprep.mubr.bf16.mxu0 %v2822_v1  ;;  %v1955_v5 = vsel %vm1953_vm15, %v1950_v59, %v1952_v61  ;;  %v1966_v10 = vsel %vm334_vm1, %v1952_v61, 0 }
 0x228   : > { %v2055_v2 = vpop.permute.xlu1 %2054 }
 0x22a   : > { %v2057_v6 = vpop.permute.xlu0 %2056 }
 0x22b   : > { %2734 = vmatmul.mubr.msk.bf16.vlgmr.msra.gmra.mxu1 %vm330_vm2, %v2587_v62  ;;  %v2060_v16 = vsel %vm866_vm8, %v2055_v2, %v2057_v6 }
 0x22c   : > { %2738 = vmatpush3.bf16.msra.mxu1 %v1859_v3  ;;  %2589 = vmatmul.mubr.msk.bf16.vlgmr.msra.gmra.mxu0 %vm330_vm2, %v2587_v62  ;;  %v2059_v7 = vpop.permute.xlu1 %2058  ;;  %v2066_v19 = vsel %vm334_vm1, %v2060_v16, 0 }
 0x22d   : > { %1876 = vmatpush1.bf16.msra.mxu0 %v1853_v4  ;;  %2739 = vmatprep.mubr.msk.bf16.mxu1 %vm2821_vm0, %v2820_v0  ;;  %v2061_v13 = vsel %vm866_vm8, %v2057_v6, %v2059_v7  ;;  %v2072_v18 = vsel %vm334_vm1, %v2059_v7, 0  ;;  %vm2458_vm8 = vcmask 678912  }
 0x22e   : > { %2596 = vmatprep.subr.msk.bf16.mxu0 %vm334_vm1, %v1955_v5  ;;  %2743 = vmatprep.subr.bf16.mxu1 %v2820_v0  ;;  %v2161_v12 = vpop.permute.xlu0 %2160 }
 0x22f   : > { %1893 = vmatprep.mubr.bf16.mxu0 %v2822_v1 }
 0x230   : > { %v2163_v14 = vpop.permute.xlu1 %2162 }
 0x231   : > { %v2167_v23 = vsel %vm2166_vm3, %v2161_v12, %v2163_v14 }
 0x232   : > { %v2165_v17 = vpop.permute.xlu0 %2164  ;;  %v2173_v26 = vsel %vm334_vm1, %v2167_v23, 0 }
 0x233   : > { %2740 = vmatmul.mubr.msk.bf16.vlgmr.msra.gmra.mxu1 %vm330_vm2, %v2591_v8  ;;  %v2168_v21 = vsel %vm2166_vm3, %v2163_v14, %v2165_v17  ;;  %v2179_v25 = vsel %vm334_vm1, %v2165_v17, 0 }
 0x234   : > { %2744 = vmatpush3.bf16.msra.mxu1 %v1966_v10  ;;  %2593 = vmatmul.mubr.msk.bf16.vlgmr.msra.gmra.mxu0 %vm330_vm2, %v2591_v8  ;;  %v2268_v20 = vpop.permute.xlu1 %2267 }
 0x235   : > { %1983 = vmatpush1.bf16.msra.mxu0 %v1960_v11  ;;  %2745 = vmatprep.mubr.msk.bf16.mxu1 %vm2821_vm0, %v2820_v0 }
 0x236   : > { %2600 = vmatprep.subr.msk.bf16.mxu0 %vm334_vm1, %v2061_v13  ;;  %2749 = vmatprep.subr.bf16.mxu1 %v2820_v0  ;;  %v2270_v27 = vpop.permute.xlu0 %2269 }
 0x237   : > { %2000 = vmatprep.mubr.bf16.mxu0 %v2822_v1  ;;  %v2274_v33 = vsel %vm2273_vm4, %v2268_v20, %v2270_v27 }
 0x238   : > { %v2272_v24 = vpop.permute.xlu1 %2271  ;;  %v2280_v42 = vsel %vm334_vm1, %v2274_v33, 0 }
 0x239   : > { %v2275_v28 = vsel %vm2273_vm4, %v2270_v27, %v2272_v24  ;;  %v2286_v39 = vsel %vm334_vm1, %v2272_v24, 0 }
 0x23b   : > { %2746 = vmatmul.mubr.msk.bf16.vlgmr.msra.gmra.mxu1 %vm330_vm2, %v2595_v15 }
 0x23c   : > { %2750 = vmatpush3.bf16.msra.mxu1 %v2072_v18  ;;  %2597 = vmatmul.mubr.msk.bf16.vlgmr.msra.gmra.mxu0 %vm330_vm2, %v2595_v15 }
 0x23d   : > { %2089 = vmatpush1.bf16.msra.mxu0 %v2066_v19  ;;  %2751 = vmatprep.mubr.msk.bf16.mxu1 %vm2821_vm0, %v2820_v0 }
 0x23e   : > { %2604 = vmatprep.subr.msk.bf16.mxu0 %vm334_vm1, %v2168_v21  ;;  %2755 = vmatprep.subr.bf16.mxu1 %v2820_v0 }
 0x23f   : > { %2106 = vmatprep.mubr.bf16.mxu0 %v2822_v1 }
 0x243   : > { %2752 = vmatmul.mubr.msk.bf16.vlgmr.msra.gmra.mxu1 %vm330_vm2, %v2599_v22 }
 0x244   : > { %2756 = vmatpush3.bf16.msra.mxu1 %v2179_v25  ;;  %2601 = vmatmul.mubr.msk.bf16.vlgmr.msra.gmra.mxu0 %vm330_vm2, %v2599_v22 }
 0x245   : > { %2196 = vmatpush1.bf16.msra.mxu0 %v2173_v26  ;;  %2757 = vmatprep.mubr.msk.bf16.mxu1 %vm2821_vm0, %v2820_v0 }
 0x246   : > { %2608 = vmatprep.subr.msk.bf16.mxu0 %vm334_vm1, %v2275_v28  ;;  %2761 = vmatprep.subr.bf16.mxu1 %v2820_v0  ;;  %vm2396_vm1 = vcmask 261248  }
 0x247   : > { %2213 = vmatprep.mubr.bf16.mxu0 %v2822_v1 }
 0x24b   : > { %2758 = vmatmul.mubr.msk.bf16.vlgmr.msra.gmra.mxu1 %vm330_vm2, %v2603_v31 }
 0x24c   : > { %2762 = vmatpush3.bf16.msra.mxu1 %v2286_v39  ;;  %2605 = vmatmul.mubr.msk.bf16.vlgmr.msra.gmra.mxu0 %vm330_vm2, %v2603_v31 }
 0x24d   : > { %2303 = vmatpush1.bf16.msra.mxu0 %v2280_v42  ;;  %2763 = vmatprep.mubr.msk.bf16.mxu1 %vm2821_vm0, %v2820_v0  ;;  %vm2391_vm0 = vcmask 130048  }
 0x24e   : > { %2320 = vmatprep.mubr.bf16.mxu0 %v2822_v1 }
 0x253   : > { %2764 = vmatmul.mubr.msk.bf16.vlgmr.msra.gmra.mxu1 %vm330_vm2, %v2607_v38 }
 0x254   : > { %2609 = vmatmul.mubr.msk.bf16.vlgmr.msra.gmra.mxu0 %vm330_vm2, %v2607_v38  ;;  %vm2401_vm2 = vcmask 392448  }
 0x2d3   : > { %v1526_v47 = vpop.f32.mrf.mxu1 }
 0x2d4   : > { %v1485_v46 = vpop.f32.mrf.mxu0 }
 0x2d5   : > { %v2717_v35 = vpop.f32.mrf.mxu1 }
 0x2d6   : > { %v1487_v43 = vpop.f32.mrf.mxu0 }
 0x2d7   : > { %v1529_v48 = vpop.f32.mrf.mxu1 }
 0x2d8   : > { %v1489_v37 = vpop.f32.mrf.mxu0 }
 0x2d9   : > { %v2718_v45 = vpop.f32.mrf.mxu1 }
 0x2da   : > { %v1490_v0 = vpop.f32.mrf.mxu0 }
 0x2db   : > { %v1619_v49 = vpop.f32.mrf.mxu1 }
 0x2dc   : > { %v1578_v50 = vpop.f32.mrf.mxu0  ;;  %v1620_v31 = vadd.f32 %v1619_v49, %v1526_v47 }
 0x2dd   : > { %v2723_v51 = vpop.f32.mrf.mxu1  ;;  %v1579_v36 = vadd.f32 %v1578_v50, %v1485_v46 }
 0x2de   : > { %v1580_v1 = vpop.f32.mrf.mxu0 }
 0x2df   : > { %v1622_v52 = vpop.f32.mrf.mxu1  ;;  %v1581_v37 = vadd.f32 %v1580_v1, %v1487_v43 }
 0x2e0   : > { %v1582_v53 = vpop.f32.mrf.mxu0 }
 0x2e1   : > { %v2724_v54 = vpop.f32.mrf.mxu1 }
 0x2e2   : > { %v1583_v55 = vpop.f32.mrf.mxu0 }
 0x2e3   : > { %v1723_v56 = vpop.f32.mrf.mxu1 }
 0x2e4   : > { %v1682_v57 = vpop.f32.mrf.mxu0  ;;  %v1731_v40 = vadd.f32 %v1723_v56, %v1620_v31 }
 0x2e5   : > { %v2729_v58 = vpop.f32.mrf.mxu1  ;;  %v1729_v42 = vadd.f32 %v1682_v57, %v1579_v36 }
 0x2e6   : > { %v1684_v59 = vpop.f32.mrf.mxu0 }
 0x2e7   : > { %v1726_v60 = vpop.f32.mrf.mxu1  ;;  %v1730_v53 = vadd.f32 %v1684_v59, %v1581_v37 }
 0x2e8   : > { %v1686_v61 = vpop.f32.mrf.mxu0 }
 0x2e9   : > { %v2730_v62 = vpop.f32.mrf.mxu1 }
 0x2ea   : > { %v1687_v63 = vpop.f32.mrf.mxu0 }
 0x2eb   : > { %v1829_v2 = vpop.f32.mrf.mxu1  ;;  %v1335_v63 = vpop.permute.xlu0 %1334 }
 0x2ec   : > { %v1788_v3 = vpop.f32.mrf.mxu0  ;;  %v1837_v32 = vadd.f32 %v1829_v2, %v1731_v40 }
 0x2ed   : > { %v2735_v4 = vpop.f32.mrf.mxu1  ;;  %v1835_v35 = vadd.f32 %v1788_v3, %v1729_v42 }
 0x2ee   : > { %v1790_v5 = vpop.f32.mrf.mxu0 }
 0x2ef   : > { %v1832_v6 = vpop.f32.mrf.mxu1  ;;  %v1836_v46 = vadd.f32 %v1790_v5, %v1730_v53 }
 0x2f0   : > { %v1792_v7 = vpop.f32.mrf.mxu0  ;;  %v2376_v6 = vpop.permute.xlu1 %2375 }
 0x2f1   : > { %v2736_v8 = vpop.f32.mrf.mxu1 }
 0x2f2   : > { %v1793_v9 = vpop.f32.mrf.mxu0  ;;  %v1419_v8 = vadd.f32 %v3184_v30, %v1335_v63 }
 0x2f3   : > { %v1936_v10 = vpop.f32.mrf.mxu1 }
 0x2f4   : > { %v1895_v11 = vpop.f32.mrf.mxu0  ;;  %v1944_v45 = vadd.f32 %v1936_v10, %v1837_v32 }
 0x2f5   : > { %v2741_v12 = vpop.f32.mrf.mxu1  ;;  %v1942_v51 = vadd.f32 %v1895_v11, %v1835_v35  ;;  %v1378_v11 = vadd.f32 %v3182_v29, %v1335_v63 }
 0x2f6   : > { %v1897_v13 = vpop.f32.mrf.mxu0 }
 0x2f7   : > { %v1939_v14 = vpop.f32.mrf.mxu1  ;;  %v1943_v60 = vadd.f32 %v1897_v13, %v1836_v46 }
 0x2f8   : > { %v1899_v15 = vpop.f32.mrf.mxu0 }
 0x2f9   : > { %v2742_v16 = vpop.f32.mrf.mxu1 }
 0x2fa   : > { %v1900_v17 = vpop.f32.mrf.mxu0 }
 0x2fb   : > { %v2043_v18 = vpop.f32.mrf.mxu1 }
 0x2fc   : > { %v2002_v19 = vpop.f32.mrf.mxu0  ;;  %v2051_v54 = vadd.f32 %v2043_v18, %v1944_v45 }
 0x2fd   : > { %v2747_v20 = vpop.f32.mrf.mxu1  ;;  %v2049_v47 = vadd.f32 %v2002_v19, %v1942_v51 }
 0x2fe   : > { %v2004_v21 = vpop.f32.mrf.mxu0 }
 0x2ff   : > { %v2046_v22 = vpop.f32.mrf.mxu1  ;;  %v2050_v1 = vadd.f32 %v2004_v21, %v1943_v60 }
 0x300   : > { %v2006_v23 = vpop.f32.mrf.mxu0 }
 0x301   : > { %v2748_v24 = vpop.f32.mrf.mxu1  ;;  %v1380_v23 = vadd.f32 %v3189_v34, %v1335_v63 }
 0x302   : > { %v2007_v25 = vpop.f32.mrf.mxu0 }
 0x303   : > { %v2149_v26 = vpop.f32.mrf.mxu1 }
 0x304   : > { %v2108_v27 = vpop.f32.mrf.mxu0  ;;  %v2157_v50 = vadd.f32 %v2149_v26, %v2051_v54 }
 0x305   : > { %v2753_v28 = vpop.f32.mrf.mxu1  ;;  %v2155_v58 = vadd.f32 %v2108_v27, %v2049_v47 }
 0x306   : > { %v2110_v33 = vpop.f32.mrf.mxu0 }
 0x307   : > { %v2152_v39 = vpop.f32.mrf.mxu1  ;;  %v2156_v9 = vadd.f32 %v2110_v33, %v2050_v1 }
 0x308   : > { %v2112_v41 = vpop.f32.mrf.mxu0 }
 0x309   : > { %v2754_v44 = vpop.f32.mrf.mxu1 }
 0x30a   : > { %v2113_v38 = vpop.f32.mrf.mxu0 }
 0x30b   : > { %v2256_v48 = vpop.f32.mrf.mxu1 }
 0x30c   : > { %v2215_v0 = vpop.f32.mrf.mxu0  ;;  %v2264_v61 = vadd.f32 %v2256_v48, %v2157_v50 }
 0x30d   : > { %v2759_v52 = vpop.f32.mrf.mxu1  ;;  %v2262_v2 = vadd.f32 %v2215_v0, %v2155_v58 }
 0x30e   : > { %v2217_v55 = vpop.f32.mrf.mxu0 }
 0x30f   : > { %v2259_v49 = vpop.f32.mrf.mxu1  ;;  %v2263_v14 = vadd.f32 %v2217_v55, %v2156_v9 }
 0x310   : > { %v2219_v56 = vpop.f32.mrf.mxu0 }
 0x311   : > { %v2760_v57 = vpop.f32.mrf.mxu1 }
 0x312   : > { %v2220_v62 = vpop.f32.mrf.mxu0 }
 0x313   : > { %v2363_v43 = vpop.f32.mrf.mxu1 }
 0x314   : > { %v2371_v3 = vadd.f32 %v2363_v43, %v2264_v61  ;;  %v2322_v4 = vpop.f32.mrf.mxu0 }
 0x315   : > { %v2369_v59 = vadd.f32 %v2322_v4, %v2262_v2  ;;  %v2765_v7 = vpop.f32.mrf.mxu1 }
 0x316   : > { %v2380_v5 = vadd.f32 %v2376_v6, %v2371_v3  ;;  %v2324_v10 = vpop.f32.mrf.mxu0 }
 0x317   : > { %v2378_v12 = vadd.f32 %v2376_v6, %v2369_v59  ;;  %v2366_v13 = vpop.f32.mrf.mxu1  ;;  %v2370_v19 = vadd.f32 %v2324_v10, %v2263_v14 }
 0x318   : > { %v2326_v15 = vpop.f32.mrf.mxu0  ;;  %v2383_v16 = vadd.f32 %v2380_v5, %v1419_v8 }
 0x319   : > { %v2381_v17 = vadd.f32 %v2378_v12, %v1378_v11  ;;  %v2766_v18 = vpop.f32.mrf.mxu1  ;;  %v2379_v30 = vadd.f32 %v2376_v6, %v2370_v19 }
 0x31a   : > { %v2327_v20 = vpop.f32.mrf.mxu0  ;;  %v2386_v21 = vmax.f32 %v2383_v16, 0.0 }
 0x31b   : > { %v2384_v22 = vmax.f32 %v2381_v17, 0.0  ;;  %v2382_v29 = vadd.f32 %v2379_v30, %v1380_v23 }
 0x31c   : > { %2456 = vrot.lane.b32.xlu0 %v2386_v21, %s2838_s22 }
 0x31d   : > { %2388 = vrot.lane.b32.xlu1 %v2384_v22, %s2834_s11  ;;  %v2385_v24 = vmax.f32 %v2382_v29, 0.0  ;;  %s2844_s11 = smov 101  }
 0x320   : > { %2462 = vrot.lane.b32.xlu0 %v2386_v21, %s2839_s23 }
 0x321   : > { %2393 = vrot.lane.b32.xlu1 %v2384_v22, %s2840_s24 }
 0x324   : > { %2419 = vrot.lane.b32.xlu0 %v2384_v22, %s2841_s25 }
 0x325   : > { %2398 = vrot.lane.b32.xlu1 %v2384_v22, %s2842_s26 }
 0x328   : > { %2433 = vrot.lane.b32.xlu0 %v2385_v24, %s2827_s15  ;;  %s2850_s15 = smov 95  }
 0x329   : > { %2403 = vrot.lane.b32.xlu1 %v2384_v22, %s2843_s30 }
 0x32c   : > { %2437 = vrot.lane.b32.xlu0 %v2385_v24, %s2836_s14 }
 0x32d   : > { %2408 = vrot.lane.b32.xlu1 %v2384_v22, %s2844_s11 }
 0x330   : > { %2441 = vrot.lane.b32.xlu0 %v2385_v24, %s2845_s9 }
 0x331   : > { %2413 = vrot.lane.b32.xlu1 %v2384_v22, %s2846_s10 }
 0x334   : > { %2445 = vrot.lane.b32.xlu0 %v2385_v24, %s2847_s12 }
 0x335   : > { %2454 = vrot.lane.b32.xlu1 %v2385_v24, %s2838_s22 }
 0x338   : > { %2449 = vrot.lane.b32.xlu0 %v2385_v24, %s2848_s13 }
 0x339   : > { %2421 = vrot.lane.b32.xlu1 %v2385_v24, %s2841_s25 }
 0x33c   : > { %2466 = vrot.lane.b32.xlu0 %v2386_v21, %s2849_s17 }
 0x33d   : > { %2428 = vrot.lane.b32.xlu1 %v2385_v24, %s2850_s15 }
 0x38e   : > { %v2457_v34 = vpop.permute.xlu0 %2456 }
 0x38f   : > { %v2389_v25 = vpop.permute.xlu1 %2388 }
 0x390   : > { %2392 = vst.msk [vmem:[%s3214_s19] sm:$0xff] %vm2391_vm0, %v2389_v25 }
 0x392   : > { %v2463_v26 = vpop.permute.xlu0 %2462 }
 0x393   : > { %v2394_v27 = vpop.permute.xlu1 %2393 }
 0x394   : > { %2397 = vst.msk [vmem:[%s3214_s19] sm:$0xff] %vm2396_vm1, %v2394_v27 }
 0x396   : > { %v2420_v28 = vpop.permute.xlu0 %2419 }
 0x397   : > { %v2399_v31 = vpop.permute.xlu1 %2398 }
 0x398   : > { %2402 = vst.msk [vmem:[%s3214_s19] sm:$0xff] %vm2401_vm2, %v2399_v31 }
 0x39a   : > { %v2434_v33 = vpop.permute.xlu0 %2433 }
 0x39b   : > { %2436 = vst.msk [vmem:[%s3214_s19 + $0x8] sm:$0xff] %vm2391_vm0, %v2434_v33  ;;  %v2404_v36 = vpop.permute.xlu1 %2403 }
 0x39c   : > { %2407 = vst.msk [vmem:[%s3214_s19] sm:$0xff] %vm2406_vm5, %v2404_v36 }
 0x39e   : > { %v2438_v39 = vpop.permute.xlu0 %2437 }
 0x39f   : > { %2440 = vst.msk [vmem:[%s3214_s19 + $0x8] sm:$0xff] %vm2396_vm1, %v2438_v39  ;;  %v2409_v40 = vpop.permute.xlu1 %2408 }
 0x3a0   : > { %2412 = vst.msk [vmem:[%s3214_s19] sm:$0xff] %vm2411_vm6, %v2409_v40 }
 0x3a2   : > { %v2442_v41 = vpop.permute.xlu0 %2441 }
 0x3a3   : > { %2444 = vst.msk [vmem:[%s3214_s19 + $0x8] sm:$0xff] %vm2401_vm2, %v2442_v41  ;;  %v2414_v42 = vpop.permute.xlu1 %2413 }
 0x3a4   : > { %2417 = vst.msk [vmem:[%s3214_s19] sm:$0xff] %vm2416_vm7, %v2414_v42 }
 0x3a6   : > { %v2446_v44 = vpop.permute.xlu0 %2445 }
 0x3a7   : > { %2448 = vst.msk [vmem:[%s3214_s19 + $0x8] sm:$0xff] %vm2406_vm5, %v2446_v44  ;;  %v2455_v32 = vpop.permute.xlu1 %2454 }
 0x3a8   : > { %v2459_v35 = vsel %vm2458_vm8, %v2455_v32, %v2457_v34 }
 0x3aa   : > { %v2450_v38 = vpop.permute.xlu0 %2449 }
 0x3ab   : > { %2452 = vst.msk [vmem:[%s3214_s19 + $0x8] sm:$0xff] %vm2411_vm6, %v2450_v38  ;;  %v2422_v48 = vpop.permute.xlu1 %2421 }
 0x3ac   : > { %2461 = vst.msk [vmem:[%s3214_s19 + $0x8] sm:$0xff] %vm2416_vm7, %v2459_v35  ;;  %v2424_v37 = vsel %vm2423_vm9, %v2420_v28, %v2422_v48 }
 0x3ad   : > { %2427 = vst.msk [vmem:[%s3214_s19] sm:$0xff] %vm2426_vm10, %v2424_v37  ;;  %2465 = vst.msk [vmem:[%s3214_s19 + $0x8] sm:$0xff] %vm2426_vm10, %v2463_v26 }
 0x3ae   : > { %v2467_v45 = vpop.permute.xlu0 %2466 }
 0x3af   : > { %2469 = vst.msk [vmem:[%s3214_s19 + $0x8] sm:$0xff] %vm2431_vm11, %v2467_v45  ;;  %v2429_v0 = vpop.permute.xlu1 %2428 }
 0x3b0   : > { %2432 = vst.msk [vmem:[%s3214_s19] sm:$0xff] %vm2431_vm11, %v2429_v0 }
 0x3b1 PF: > { %s18_s27 = sadd.s32 1, %s2818_s27  }
 0x3b2   : > { %p15_p4 = scmp.ge.s32.totalorder %s18_s27, 4  }
 0x3b4   :  { %17 = sbr.rel (!%p15_p4) target bundleno = 1 (0x1), region = 98 }

</bundles_post_ra>
